<compile_context>
chip_gen: v5e
topology: v5e:2x2
jax: 0.10.0
libtpu: 0.0.40
codegen_flags: <defaults>
</compile_context>

<pallas_src>
import functools
import math

import jax
import jax.numpy as jnp
from jax.experimental import pallas as pl
from jax.experimental.pallas import tpu as pltpu


_CLS_PAD = 128          # lane-dense classifier output width
_ROW_TARGET = 512       # row-tile target (measured ~85% of HBM roofline at 512)
_FFN_COL_TARGET = 1024  # F-axis chunk target for the FFN K-loop


# ---------------------------------------------------------------------------
# Small planning / spec helpers
# ---------------------------------------------------------------------------

def _round_up(x, m):
    return ((x + m - 1) // m) * m


def _cdiv(a, b):
    return -(-a // b)


def _plan_rows(m, target=_ROW_TARGET):
    """Pick (row_tile, padded_rows).  Pads M up instead of falling back to one
    giant block; splits a single-step grid in two so both v7x TCs get work."""
    m8 = _round_up(m, 8)
    if m8 <= target:
        tm = m8
    else:
        n = _cdiv(m8, target)
        tm = _round_up(_cdiv(m8, n), 8)
    mp = _round_up(m8, tm)
    if mp == tm and tm >= 16 and tm % 16 == 0:   # grid of 1 -> split for dual-TC v7x
        tm //= 2
        mp = _round_up(m8, tm)
    return tm, mp


def _col_tile(f, target=_FFN_COL_TARGET):
    """F-axis chunk for the FFN K-loop (lane-aligned divisor of F)."""
    if f <= target:
        return f
    for t in range(target, 127, -128):
        if f % t == 0:
            return t
    return f  # TODO(synk): pad F when it is not 128-divisible (never for DistilBERT)


def _pad_rows(x, mp):
    m = x.shape[0]
    if mp == m:
        return x
    return jnp.pad(x, ((0, mp - m),) + ((0, 0),) * (x.ndim - 1))


@functools.lru_cache(maxsize=None)
def _vmem_limit():
    """Generation-aware scoped-VMEM budget: ~48 MiB on v7x (64 MiB part),
    ~96 MiB on v5e/v6e (128 MiB parts)."""
    try:
        cap = int(pltpu.get_tpu_info().vmem_capacity_bytes)
    except Exception:
        cap = 64 * 1024 * 1024
    return max(32 * 1024 * 1024, (cap * 3) // 4)


def _compiler_params(semantics):
    return pltpu.CompilerParams(
        dimension_semantics=semantics,
        vmem_limit_bytes=_vmem_limit(),
    )


def _probe_kernel(x_ref, o_ref):
    o_ref[...] = x_ref[...] + 1.0


@functools.lru_cache(maxsize=None)
def _buffered_supported():
    """Probe once whether BlockSpec(pipeline_mode=pl.Buffered(1)) lowers/runs."""
    try:
        out = pl.pallas_call(
            _probe_kernel,
            out_shape=jax.ShapeDtypeStruct((8, 128), jnp.float32),
            grid=(1,),
            in_specs=[pl.BlockSpec((8, 128), lambda i: (0, 0),
                                   pipeline_mode=pl.Buffered(1))],
            out_specs=pl.BlockSpec((8, 128), lambda i: (0, 0)),
            compiler_params=pltpu.CompilerParams(
                dimension_semantics=("arbitrary",)),
        )(jnp.zeros((8, 128), jnp.float32))
        jax.block_until_ready(out)
        return True
    except Exception:
        return False


def _weight_spec(block_shape, index_map):
    """Grid-constant (resident) block: single-buffered to halve VMEM residency."""
    if _buffered_supported():
        return pl.BlockSpec(block_shape, index_map, pipeline_mode=pl.Buffered(1))
    return pl.BlockSpec(block_shape, index_map)


# ---------------------------------------------------------------------------
# Pallas kernels
# ---------------------------------------------------------------------------

def _gelu_f32(x):
    # exact (erf) GELU, as used by HF DistilBERT (tanh-approx would free VALU
    # slots but breaks strict parity; keep erf).
    return 0.5 * x * (1.0 + jax.lax.erf(x * (1.0 / math.sqrt(2.0))))


def _ln_math(x, g, b, eps):
    mean = jnp.mean(x, axis=-1, keepdims=True)
    xc = x - mean
    var = jnp.mean(xc * xc, axis=-1, keepdims=True)
    return xc * jax.lax.rsqrt(var + eps) * g + b


def _linear_kernel(x_ref, w_ref, b_ref, o_ref):
    acc = jnp.dot(x_ref[...], w_ref[...], preferred_element_type=jnp.float32)
    o_ref[...] = (acc + b_ref[...]).astype(o_ref.dtype)


def _layernorm_kernel(x_ref, g_ref, b_ref, o_ref, *, eps):
    x = x_ref[...].astype(jnp.float32)
    o_ref[...] = _ln_math(x, g_ref[...], b_ref[...], eps).astype(o_ref.dtype)


def _linear_res_ln_kernel(x_ref, res_ref, w_ref, b_ref, g_ref, bn_ref, o_ref, *, eps):
    # attention-output projection fused with residual add + LayerNorm (LN1)
    y = jnp.dot(x_ref[...], w_ref[...], preferred_element_type=jnp.float32)
    y = y + b_ref[...] + res_ref[...].astype(jnp.float32)
    o_ref[...] = _ln_math(y, g_ref[...], bn_ref[...], eps).astype(o_ref.dtype)


def _ffn_res_ln_kernel(x_ref, w1_ref, b1_ref, w2_ref, b2_ref, g_ref, bn_ref,
                       o_ref, acc_ref, *, eps):
    # fused lin1 -> GELU -> lin2, F-axis chunked with an f32 accumulator; the
    # residual add + LayerNorm (LN2) happen on the final F chunk.
    f = pl.program_id(1)

    @pl.when(f == 0)
    def _():
        acc_ref[...] = jnp.zeros_like(acc_ref)

    t = jnp.dot(x_ref[...], w1_ref[...], preferred_element_type=jnp.float32)
    t = _gelu_f32(t + b1_ref[...])
    acc_ref[...] += jnp.dot(t.astype(w2_ref.dtype), w2_ref[...],
                            preferred_element_type=jnp.float32)

    @pl.when(f == pl.num_programs(1) - 1)
    def _():
        y = acc_ref[...] + b2_ref[...] + x_ref[...].astype(jnp.float32)  # + residual
        o_ref[...] = _ln_math(y, g_ref[...], bn_ref[...], eps).astype(o_ref.dtype)


def _attention_kernel(qkv_ref, bias_ref, o_ref, *, n_heads, d_head):
    # One batch per grid step: all heads processed here, context written as one
    # lane-dense merged [S, D] block.  1/sqrt(Dh) is pre-folded into wq.
    d_model = n_heads * d_head
    bias = bias_ref[0]                                           # [1, S] f32
    outs = []
    for h in range(n_heads):
        q = qkv_ref[0, :, h * d_head:(h + 1) * d_head]           # [S, Dh] bf16
        k = qkv_ref[0, :, d_model + h * d_head:d_model + (h + 1) * d_head]
        v = qkv_ref[0, :, 2 * d_model + h * d_head:2 * d_model + (h + 1) * d_head]
        s = jnp.einsum("qd,kd->qk", q, k, preferred_element_type=jnp.float32)
        s = s + bias                                             # additive pad mask
        m = jnp.max(s, axis=-1, keepdims=True)
        p = jnp.exp(s - m)
        denom = jnp.sum(p, axis=-1, keepdims=True)
        p = p * pl.reciprocal(denom, approx=True)                # EUP divide
        outs.append(jnp.einsum("qk,kd->qd", p.astype(v.dtype), v,
                               preferred_element_type=jnp.float32))
    # TODO(synk): at real seq length (S=512) tile the key axis flash-style with
    # running max/sum scratch instead of full [S, S] scores per head (v7x VMEM).
    o_ref[0] = jnp.concatenate(outs, axis=-1).astype(o_ref.dtype)


def _head_kernel(x_ref, w1_ref, b1_ref, w2_ref, b2_ref, o_ref):
    # pre_classifier -> ReLU -> (dropout: eval identity) -> classifier, fused
    t = jnp.dot(x_ref[...], w1_ref[...], preferred_element_type=jnp.float32)
    t = jnp.maximum(t + b1_ref[...], 0.0)
    y = jnp.dot(t.astype(w2_ref.dtype), w2_ref[...],
                preferred_element_type=jnp.float32) + b2_ref[...]
    o_ref[...] = y.astype(o_ref.dtype)


# ---------------------------------------------------------------------------
# Kernel wrappers (row tiling, padding, BlockSpecs)
# ---------------------------------------------------------------------------

def linear(x, w, b, out_dtype=None):
    M, K = x.shape
    N = w.shape[1]
    tm, Mp = _plan_rows(M)
    out_dtype = out_dtype or x.dtype
    y = pl.pallas_call(
        _linear_kernel,
        out_shape=jax.ShapeDtypeStruct((Mp, N), out_dtype),
        grid=(Mp // tm,),
        in_specs=[pl.BlockSpec((tm, K), lambda i: (i, 0)),
                  _weight_spec((K, N), lambda i: (0, 0)),
                  _weight_spec((1, N), lambda i: (0, 0))],
        out_specs=pl.BlockSpec((tm, N), lambda i: (i, 0)),
        compiler_params=_compiler_params(("parallel",)),
    )(_pad_rows(x, Mp), w, b)
    return y[:M] if Mp != M else y


def layernorm(x, gamma, beta, eps=1e-12, out_dtype=None):
    M, D = x.shape
    tm, Mp = _plan_rows(M)
    out_dtype = out_dtype or x.dtype
    y = pl.pallas_call(
        functools.partial(_layernorm_kernel, eps=eps),
        out_shape=jax.ShapeDtypeStruct((Mp, D), out_dtype),
        grid=(Mp // tm,),
        in_specs=[pl.BlockSpec((tm, D), lambda i: (i, 0)),
                  _weight_spec((1, D), lambda i: (0, 0)),
                  _weight_spec((1, D), lambda i: (0, 0))],
        out_specs=pl.BlockSpec((tm, D), lambda i: (i, 0)),
        compiler_params=_compiler_params(("parallel",)),
    )(_pad_rows(x, Mp), gamma, beta)
    return y[:M] if Mp != M else y


def attn_out_ln(ctx, w, b, residual, gamma, beta, eps=1e-12, out_dtype=jnp.bfloat16):
    M, K = ctx.shape
    N = w.shape[1]
    tm, Mp = _plan_rows(M)
    y = pl.pallas_call(
        functools.partial(_linear_res_ln_kernel, eps=eps),
        out_shape=jax.ShapeDtypeStruct((Mp, N), out_dtype),
        grid=(Mp // tm,),
        in_specs=[pl.BlockSpec((tm, K), lambda i: (i, 0)),
                  pl.BlockSpec((tm, N), lambda i: (i, 0)),        # residual tile
                  _weight_spec((K, N), lambda i: (0, 0)),
                  _weight_spec((1, N), lambda i: (0, 0)),
                  _weight_spec((1, N), lambda i: (0, 0)),
                  _weight_spec((1, N), lambda i: (0, 0))],
        out_specs=pl.BlockSpec((tm, N), lambda i: (i, 0)),
        compiler_params=_compiler_params(("parallel",)),
    )(_pad_rows(ctx, Mp), _pad_rows(residual, Mp), w, b, gamma, beta)
    return y[:M] if Mp != M else y


def ffn_res_ln(x, w1, b1, w2, b2, gamma, beta, eps=1e-12, out_dtype=jnp.bfloat16):
    M, D = x.shape
    F = w1.shape[1]
    tm, Mp = _plan_rows(M)
    tf = _col_tile(F)
    y = pl.pallas_call(
        functools.partial(_ffn_res_ln_kernel, eps=eps),
        out_shape=jax.ShapeDtypeStruct((Mp, D), out_dtype),
        grid=(Mp // tm, F // tf),
        in_specs=[pl.BlockSpec((tm, D), lambda i, f: (i, 0)),     # resident over f
                  pl.BlockSpec((D, tf), lambda i, f: (0, f)),     # w1 chunk
                  pl.BlockSpec((1, tf), lambda i, f: (0, f)),     # b1 chunk
                  pl.BlockSpec((tf, D), lambda i, f: (f, 0)),     # w2 chunk
                  _weight_spec((1, D), lambda i, f: (0, 0)),      # b2
                  _weight_spec((1, D), lambda i, f: (0, 0)),      # ln gamma
                  _weight_spec((1, D), lambda i, f: (0, 0))],     # ln beta
        out_specs=pl.BlockSpec((tm, D), lambda i, f: (i, 0)),
        scratch_shapes=[pltpu.VMEM((tm, D), jnp.float32)],
        compiler_params=_compiler_params(("parallel", "arbitrary")),
    )(_pad_rows(x, Mp), w1, b1, w2, b2, gamma, beta)
    return y[:M] if Mp != M else y


def attention(qkv, bias, n_heads, d_head, out_dtype=jnp.bfloat16):
    # qkv: [B, S, 3D] bf16 (columns ordered [q|k|v] x [head, Dh]);
    # bias: [B, 1, S] f32 (0 keep / -1e9 pad)
    B, S, threeD = qkv.shape
    D = n_heads * d_head
    return pl.pallas_call(
        functools.partial(_attention_kernel, n_heads=n_heads, d_head=d_head),
        out_shape=jax.ShapeDtypeStruct((B, S, D), out_dtype),
        grid=(B,),
        in_specs=[pl.BlockSpec((1, S, threeD), lambda b: (b, 0, 0)),
                  pl.BlockSpec((1, 1, S), lambda b: (b, 0, 0))],
        out_specs=pl.BlockSpec((1, S, D), lambda b: (b, 0, 0)),
        compiler_params=_compiler_params(("parallel",)),
    )(qkv, bias)


def classifier_head(x, w1, b1, w2, b2):
    M, D = x.shape
    N = w2.shape[1]
    tm, Mp = _plan_rows(M)
    y = pl.pallas_call(
        _head_kernel,
        out_shape=jax.ShapeDtypeStruct((Mp, N), jnp.float32),
        grid=(Mp // tm,),
        in_specs=[pl.BlockSpec((tm, D), lambda i: (i, 0)),
                  _weight_spec((D, D), lambda i: (0, 0)),
                  _weight_spec((1, D), lambda i: (0, 0)),
                  _weight_spec((D, N), lambda i: (0, 0)),
                  _weight_spec((1, N), lambda i: (0, 0))],
        out_specs=pl.BlockSpec((tm, N), lambda i: (i, 0)),
        compiler_params=_compiler_params(("parallel",)),
    )(_pad_rows(x, Mp), w1, b1, w2, b2)
    return y[:M] if Mp != M else y


# ---------------------------------------------------------------------------
# Model: scaled-down DistilBERT + pre_classifier + classifier
# ---------------------------------------------------------------------------

CFG = dict(
    vocab=100,       # (30522 in real distilbert-base-uncased)
    max_pos=16,      # (512)
    dim=32,          # (768)
    n_layers=2,      # (6)
    n_heads=2,       # (12)
    ffn=128,         # (3072)
    class_num=5,
)


def _dense_init(key, fan_in, fan_out):
    kw, kb = jax.random.split(key)
    w = jax.random.normal(kw, (fan_in, fan_out), jnp.float32) * 0.02
    b = jax.random.normal(kb, (1, fan_out), jnp.float32) * 0.02
    return w, b


def init_params(key, cfg):
    D, F = cfg["dim"], cfg["ffn"]
    keys = jax.random.split(key, 4 + cfg["n_layers"])
    params = {}
    params["word_emb"] = jax.random.normal(keys[0], (cfg["vocab"], D), jnp.float32) * 0.02
    params["pos_emb"] = jax.random.normal(keys[1], (cfg["max_pos"], D), jnp.float32) * 0.02
    params["emb_ln_g"] = jnp.ones((1, D), jnp.float32)
    params["emb_ln_b"] = jnp.zeros((1, D), jnp.float32)

    layers = []
    for li in range(cfg["n_layers"]):
        lk = jax.random.split(keys[2 + li], 6)
        wq, bq = _dense_init(lk[0], D, D)
        wk, bk = _dense_init(lk[1], D, D)
        wv, bv = _dense_init(lk[2], D, D)
        wo, bo = _dense_init(lk[3], D, D)
        w1, b1 = _dense_init(lk[4], D, F)
        w2, b2 = _dense_init(lk[5], F, D)
        layers.append(dict(
            wq=wq, bq=bq, wk=wk, bk=bk, wv=wv, bv=bv, wo=wo, bo=bo,
            ln1_g=jnp.ones((1, D), jnp.float32), ln1_b=jnp.zeros((1, D), jnp.float32),
            w1=w1, b1=b1, w2=w2, b2=b2,
            ln2_g=jnp.ones((1, D), jnp.float32), ln2_b=jnp.zeros((1, D), jnp.float32),
        ))
    params["layers"] = layers

    pk, ck = jax.random.split(keys[-2])
    params["pre_w"], params["pre_b"] = _dense_init(pk, D, D)                 # pre_classifier
    params["cls_w"], params["cls_b"] = _dense_init(ck, D, cfg["class_num"])  # classifier
    return params


def prepare_inference_params(params, cfg):
    """Training layout -> kernel layout: fused Q|K|V weights [D, 3D] with
    1/sqrt(Dh) folded into the Q slice, bf16 matmul weights (biases / LN params
    kept f32), classifier padded to a lane-dense 128-wide output."""
    D, H = cfg["dim"], cfg["n_heads"]
    scale = 1.0 / math.sqrt(D // H)
    out = {
        "word_emb": params["word_emb"],
        "pos_emb": params["pos_emb"],
        "emb_ln_g": params["emb_ln_g"], "emb_ln_b": params["emb_ln_b"],
    }
    layers = []
    for lyr in params["layers"]:
        wqkv = jnp.concatenate([lyr["wq"] * scale, lyr["wk"], lyr["wv"]], axis=1)
        bqkv = jnp.concatenate([lyr["bq"] * scale, lyr["bk"], lyr["bv"]], axis=1)
        layers.append(dict(
            wqkv=wqkv.astype(jnp.bfloat16), bqkv=bqkv,
            wo=lyr["wo"].astype(jnp.bfloat16), bo=lyr["bo"],
            ln1_g=lyr["ln1_g"], ln1_b=lyr["ln1_b"],
            w1=lyr["w1"].astype(jnp.bfloat16), b1=lyr["b1"],
            w2=lyr["w2"].astype(jnp.bfloat16), b2=lyr["b2"],
            ln2_g=lyr["ln2_g"], ln2_b=lyr["ln2_b"],
        ))
    out["layers"] = layers
    out["pre_w"] = params["pre_w"].astype(jnp.bfloat16)
    out["pre_b"] = params["pre_b"]
    cls_w = jnp.zeros((D, _CLS_PAD), jnp.float32).at[:, :cfg["class_num"]].set(params["cls_w"])
    cls_b = jnp.zeros((1, _CLS_PAD), jnp.float32).at[:, :cfg["class_num"]].set(params["cls_b"])
    out["cls_w"] = cls_w.astype(jnp.bfloat16)
    out["cls_b"] = cls_b
    return out


def distilbert_class_forward(params, input_ids, attention_mask, cfg):
    B, S = input_ids.shape
    D, H = cfg["dim"], cfg["n_heads"]
    Dh = D // H
    M = B * S

    # embeddings: gather stays in XLA; LN is Pallas (f32 stats, bf16 out)
    h = jnp.take(params["word_emb"], input_ids, axis=0) + params["pos_emb"][None, :S, :]
    h = layernorm(h.reshape(M, D), params["emb_ln_g"], params["emb_ln_b"],
                  out_dtype=jnp.bfloat16)                                    # [M, D] bf16
    # embedding dropout (eval) -> identity

    # additive attention bias, computed once and shared by all layers/heads
    attn_bias = ((1.0 - attention_mask.astype(jnp.float32)) * (-1e9))[:, None, :]  # [B,1,S]

    for lyr in params["layers"]:
        x2 = h                                                               # residual
        qkv = linear(x2, lyr["wqkv"], lyr["bqkv"])                           # [M, 3D] bf16
        # free row-major view [B, S, 3D]; no split_heads / merge_heads transposes
        ctx = attention(qkv.reshape(B, S, 3 * D), attn_bias, H, Dh)          # [B, S, D]
        h2 = attn_out_ln(ctx.reshape(M, D), lyr["wo"], lyr["bo"],
                         residual=x2, gamma=lyr["ln1_g"], beta=lyr["ln1_b"])  # LN1 fused
        h = ffn_res_ln(h2, lyr["w1"], lyr["b1"], lyr["w2"], lyr["b2"],
                       lyr["ln2_g"], lyr["ln2_b"])                           # FFN+LN2 fused

    # classification head (matches DistillBERTClass.forward): hidden_state[:, 0]
    pooler = h.reshape(B, S, D)[:, 0, :]                                     # [B, D]
    # pre_classifier + ReLU + dropout(eval identity) + classifier, fused
    logits = classifier_head(pooler, params["pre_w"], params["pre_b"],
                             params["cls_w"], params["cls_b"])               # [B, 128] f32
    return logits[:, :cfg["class_num"]]                                      # drop lane pad


# ---------------------------------------------------------------------------
# Main
# ---------------------------------------------------------------------------

if __name__ == "__main__":
    cfg = CFG
    B, S = 2, 8

    # probe Buffered(1) support once, eagerly, outside jit
    _buffered_supported()

    key = jax.random.PRNGKey(0)
    k_params, k_ids = jax.random.split(key)

    params = prepare_inference_params(init_params(k_params, cfg), cfg)
    input_ids = jax.random.randint(k_ids, (B, S), 0, cfg["vocab"], dtype=jnp.int32)
    # last two tokens of sample 1 are padding
    attention_mask = jnp.array(
        [[1] * S,
         [1] * (S - 2) + [0, 0]], dtype=jnp.int32)

    fwd = jax.jit(functools.partial(distilbert_class_forward, cfg=cfg))
    logits = fwd(params, input_ids, attention_mask)
    jax.block_until_ready(logits)

    assert logits.shape == (B, cfg["class_num"])
    assert logits.dtype == jnp.float32
    print("KERNEL_OK")
</pallas_src>

<mosaic_0001>
module attributes {stable_mosaic.version = 11 : i64} {
  func.func @_probe_kernel(%arg0: i32, %arg1: memref<8x128xf32, #tpu.memory_space<vmem>>, %arg2: memref<8x128xf32, #tpu.memory_space<vmem>>) attributes {dimension_semantics = [#tpu.dimension_semantics<arbitrary>], iteration_bounds = array<i64: 1>, scalar_prefetch = 0 : i64, scratch_operands = 0 : i64, tpu.core_type = #tpu.core_type<tc>, window_params = [{pipeline_mode = #tpu.pipeline_mode<synchronous>, transform_indices = @transform_0, window_bounds = array<i64: 8, 128>}, {pipeline_mode = #tpu.pipeline_mode<synchronous>, transform_indices = @transform_1, window_bounds = array<i64: 8, 128>}]} {
    %c0 = arith.constant 0 : index
    %c0_0 = arith.constant 0 : index
    %0 = vector.load %arg1[%c0, %c0_0] : memref<8x128xf32, #tpu.memory_space<vmem>>, vector<8x128xf32>
    %cst = arith.constant 1.000000e+00 : f32
    %1 = vector.broadcast %cst : f32 to vector<8x128xf32>
    %2 = arith.addf %0, %1 : vector<8x128xf32>
    %c0_1 = arith.constant 0 : index
    %c0_2 = arith.constant 0 : index
    %3 = vector.load %arg2[%c0_1, %c0_2] : memref<8x128xf32, #tpu.memory_space<vmem>>, vector<8x128xf32>
    tpu.vector_store %arg2[%c0_1, %c0_2], %2 {strides = array<i32>} : memref<8x128xf32, #tpu.memory_space<vmem>>, vector<8x128xf32>,
    return
  }
  func.func @transform_0(%arg0: i32) -> (i32, i32) {
    %c0_i32 = arith.constant 0 : i32
    %c0_i32_0 = arith.constant 0 : i32
    %c0_i32_1 = arith.constant 0 : i32
    return %c0_i32, %c0_i32_0 : i32, i32
  }
  func.func @transform_1(%arg0: i32) -> (i32, i32) {
    %c0_i32 = arith.constant 0 : i32
    %c0_i32_0 = arith.constant 0 : i32
    %c0_i32_1 = arith.constant 0 : i32
    return %c0_i32, %c0_i32_0 : i32, i32
  }
}

module attributes {stable_mosaic.version = 11 : i64} {
  func.func @_attention_kernel(%arg0: i32, %arg1: memref<1x8x96xbf16, #tpu.memory_space<vmem>>, %arg2: memref<1x1x8xf32, #tpu.memory_space<vmem>>, %arg3: memref<1x8x32xbf16, #tpu.memory_space<vmem>>) attributes {dimension_semantics = [#tpu.dimension_semantics<parallel>], iteration_bounds = array<i64: 2>, scalar_prefetch = 0 : i64, scratch_operands = 0 : i64, tpu.core_type = #tpu.core_type<tc>, window_params = [{transform_indices = @transform_0, window_bounds = array<i64: 1, 8, 96>}, {transform_indices = @transform_1, window_bounds = array<i64: 1, 1, 8>}, {transform_indices = @transform_2, window_bounds = array<i64: 1, 8, 32>}]} {
    %c0 = arith.constant 0 : index
    %c0_0 = arith.constant 0 : index
    %c0_1 = arith.constant 0 : index
    %0 = vector.load %arg2[%c0, %c0_0, %c0_1] : memref<1x1x8xf32, #tpu.memory_space<vmem>>, vector<1x1x8xf32>
    %1 = vector.shape_cast %0 : vector<1x1x8xf32> to vector<1x8xf32>
    %c0_2 = arith.constant 0 : index
    %c0_3 = arith.constant 0 : index
    %c0_4 = arith.constant 0 : index
    %2 = vector.load %arg1[%c0_2, %c0_3, %c0_4] : memref<1x8x96xbf16, #tpu.memory_space<vmem>>, vector<1x8x16xbf16>
    %3 = vector.shape_cast %2 : vector<1x8x16xbf16> to vector<8x16xbf16>
    %c0_5 = arith.constant 0 : index
    %c0_6 = arith.constant 0 : index
    %c32 = arith.constant 32 : index
    %4 = vector.load %arg1[%c0_5, %c0_6, %c32] : memref<1x8x96xbf16, #tpu.memory_space<vmem>>, vector<1x8x16xbf16>
    %5 = vector.shape_cast %4 : vector<1x8x16xbf16> to vector<8x16xbf16>
    %c0_7 = arith.constant 0 : index
    %c0_8 = arith.constant 0 : index
    %c64 = arith.constant 64 : index
    %6 = vector.load %arg1[%c0_7, %c0_8, %c64] : memref<1x8x96xbf16, #tpu.memory_space<vmem>>, vector<1x8x16xbf16>
    %7 = vector.shape_cast %6 : vector<1x8x16xbf16> to vector<8x16xbf16>
    "tpu.trace_start"() <{level = 10 : i32, message = "qd,kd->qk"}> : () -> ()
    %cst = arith.constant dense<0.000000e+00> : vector<8x8xf32>
    %8 = tpu.matmul %3, %5, %cst {dimension_numbers = #tpu.dot_dimension_numbers<[1], [1], [0], [0], [0, 0, 1, 0], [], []>} : vector<8x16xbf16>, vector<8x16xbf16>, vector<8x8xf32> -> vector<8x8xf32>
    "tpu.trace_stop"() : () -> ()
    %9 = vector.broadcast %1 : vector<1x8xf32> to vector<8x8xf32>
    %10 = arith.addf %8, %9 : vector<8x8xf32>
    %cst_9 = arith.constant dense<0xFF800000> : vector<8xf32>
    %11 = vector.multi_reduction <maximumf>, %10, %cst_9 [1] : vector<8x8xf32> to vector<8xf32>
    %12 = vector.shape_cast %11 : vector<8xf32> to vector<8x1xf32>
    %13 = vector.broadcast %12 : vector<8x1xf32> to vector<8x8xf32>
    %14 = arith.subf %10, %13 : vector<8x8xf32>
    %15 = math.exp %14 : vector<8x8xf32>
    %cst_10 = arith.constant dense<0.000000e+00> : vector<8xf32>
    %16 = vector.multi_reduction <add>, %15, %cst_10 [1] : vector<8x8xf32> to vector<8xf32>
    %17 = vector.shape_cast %16 : vector<8xf32> to vector<8x1xf32>
    %18 = tpu.reciprocal %17 {approx = true} : vector<8x1xf32> -> vector<8x1xf32>
    %19 = vector.broadcast %18 : vector<8x1xf32> to vector<8x8xf32>
    %20 = arith.mulf %15, %19 : vector<8x8xf32>
    %21 = arith.truncf %20 : vector<8x8xf32> to vector<8x8xbf16>
    "tpu.trace_start"() <{level = 10 : i32, message = "qk,kd->qd"}> : () -> ()
    %cst_11 = arith.constant dense<0.000000e+00> : vector<8x16xf32>
    %22 = tpu.matmul %21, %7, %cst_11 {dimension_numbers = #tpu.dot_dimension_numbers<[1], [0], [0], [1], [0, 0, 1, 1], [], []>} : vector<8x8xbf16>, vector<8x16xbf16>, vector<8x16xf32> -> vector<8x16xf32>
    "tpu.trace_stop"() : () -> ()
    %c0_12 = arith.constant 0 : index
    %c0_13 = arith.constant 0 : index
    %c16 = arith.constant 16 : index
    %23 = vector.load %arg1[%c0_12, %c0_13, %c16] : memref<1x8x96xbf16, #tpu.memory_space<vmem>>, vector<1x8x16xbf16>
    %24 = vector.shape_cast %23 : vector<1x8x16xbf16> to vector<8x16xbf16>
    %c0_14 = arith.constant 0 : index
    %c0_15 = arith.constant 0 : index
    %c48 = arith.constant 48 : index
    %25 = vector.load %arg1[%c0_14, %c0_15, %c48] : memref<1x8x96xbf16, #tpu.memory_space<vmem>>, vector<1x8x16xbf16>
    %26 = vector.shape_cast %25 : vector<1x8x16xbf16> to vector<8x16xbf16>
    %c0_16 = arith.constant 0 : index
    %c0_17 = arith.constant 0 : index
    %c80 = arith.constant 80 : index
    %27 = vector.load %arg1[%c0_16, %c0_17, %c80] : memref<1x8x96xbf16, #tpu.memory_space<vmem>>, vector<1x8x16xbf16>
    %28 = vector.shape_cast %27 : vector<1x8x16xbf16> to vector<8x16xbf16>
    "tpu.trace_start"() <{level = 10 : i32, message = "qd,kd->qk"}> : () -> ()
    %cst_18 = arith.constant dense<0.000000e+00> : vector<8x8xf32>
    %29 = tpu.matmul %24, %26, %cst_18 {dimension_numbers = #tpu.dot_dimension_numbers<[1], [1], [0], [0], [0, 0, 1, 0], [], []>} : vector<8x16xbf16>, vector<8x16xbf16>, vector<8x8xf32> -> vector<8x8xf32>
    "tpu.trace_stop"() : () -> ()
    %30 = vector.broadcast %1 : vector<1x8xf32> to vector<8x8xf32>
    %31 = arith.addf %29, %30 : vector<8x8xf32>
    %cst_19 = arith.constant dense<0xFF800000> : vector<8xf32>
    %32 = vector.multi_reduction <maximumf>, %31, %cst_19 [1] : vector<8x8xf32> to vector<8xf32>
    %33 = vector.shape_cast %32 : vector<8xf32> to vector<8x1xf32>
    %34 = vector.broadcast %33 : vector<8x1xf32> to vector<8x8xf32>
    %35 = arith.subf %31, %34 : vector<8x8xf32>
    %36 = math.exp %35 : vector<8x8xf32>
    %cst_20 = arith.constant dense<0.000000e+00> : vector<8xf32>
    %37 = vector.multi_reduction <add>, %36, %cst_20 [1] : vector<8x8xf32> to vector<8xf32>
    %38 = vector.shape_cast %37 : vector<8xf32> to vector<8x1xf32>
    %39 = tpu.reciprocal %38 {approx = true} : vector<8x1xf32> -> vector<8x1xf32>
    %40 = vector.broadcast %39 : vector<8x1xf32> to vector<8x8xf32>
    %41 = arith.mulf %36, %40 : vector<8x8xf32>
    %42 = arith.truncf %41 : vector<8x8xf32> to vector<8x8xbf16>
    "tpu.trace_start"() <{level = 10 : i32, message = "qk,kd->qd"}> : () -> ()
    %cst_21 = arith.constant dense<0.000000e+00> : vector<8x16xf32>
    %43 = tpu.matmul %42, %28, %cst_21 {dimension_numbers = #tpu.dot_dimension_numbers<[1], [0], [0], [1], [0, 0, 1, 1], [], []>} : vector<8x8xbf16>, vector<8x16xbf16>, vector<8x16xf32> -> vector<8x16xf32>
    "tpu.trace_stop"() : () -> ()
    %44 = tpu.concatenate %22, %43 in 1 : vector<8x16xf32>, vector<8x16xf32> -> vector<8x32xf32>
    %45 = arith.truncf %44 : vector<8x32xf32> to vector<8x32xbf16>
    %c0_22 = arith.constant 0 : index
    %c0_23 = arith.constant 0 : index
    %c0_24 = arith.constant 0 : index
    %46 = vector.load %arg3[%c0_22, %c0_23, %c0_24] : memref<1x8x32xbf16, #tpu.memory_space<vmem>>, vector<1x8x32xbf16>
    %47 = vector.shape_cast %46 : vector<1x8x32xbf16> to vector<8x32xbf16>
    %48 = vector.shape_cast %45 : vector<8x32xbf16> to vector<1x8x32xbf16>
    tpu.vector_store %arg3[%c0_22, %c0_23, %c0_24], %48 {strides = array<i32>} : memref<1x8x32xbf16, #tpu.memory_space<vmem>>, vector<1x8x32xbf16>,
    return
  }
  func.func @transform_0(%arg0: i32) -> (i32, i32, i32) {
    %c0_i32 = arith.constant 0 : i32
    %c0_i32_0 = arith.constant 0 : i32
    %c0_i32_1 = arith.constant 0 : i32
    return %arg0, %c0_i32, %c0_i32_0 : i32, i32, i32
  }
  func.func @transform_1(%arg0: i32) -> (i32, i32, i32) {
    %c0_i32 = arith.constant 0 : i32
    %c0_i32_0 = arith.constant 0 : i32
    %c0_i32_1 = arith.constant 0 : i32
    return %arg0, %c0_i32, %c0_i32_0 : i32, i32, i32
  }
  func.func @transform_2(%arg0: i32) -> (i32, i32, i32) {
    %c0_i32 = arith.constant 0 : i32
    %c0_i32_0 = arith.constant 0 : i32
    %c0_i32_1 = arith.constant 0 : i32
    return %arg0, %c0_i32, %c0_i32_0 : i32, i32, i32
  }
}

module attributes {stable_mosaic.version = 11 : i64} {
  func.func @_linear_kernel(%arg0: i32, %arg1: memref<8x32xbf16, #tpu.memory_space<vmem>>, %arg2: memref<32x96xbf16, #tpu.memory_space<vmem>>, %arg3: memref<1x96xf32, #tpu.memory_space<vmem>>, %arg4: memref<8x96xbf16, #tpu.memory_space<vmem>>) attributes {dimension_semantics = [#tpu.dimension_semantics<parallel>], iteration_bounds = array<i64: 2>, scalar_prefetch = 0 : i64, scratch_operands = 0 : i64, tpu.core_type = #tpu.core_type<tc>, window_params = [{transform_indices = @transform_0, window_bounds = array<i64: 8, 32>}, {pipeline_mode = #tpu.pipeline_mode<synchronous>, transform_indices = @transform_1, window_bounds = array<i64: 32, 96>}, {pipeline_mode = #tpu.pipeline_mode<synchronous>, transform_indices = @transform_2, window_bounds = array<i64: 1, 96>}, {transform_indices = @transform_3, window_bounds = array<i64: 8, 96>}]} {
    %c0 = arith.constant 0 : index
    %c0_0 = arith.constant 0 : index
    %0 = vector.load %arg1[%c0, %c0_0] : memref<8x32xbf16, #tpu.memory_space<vmem>>, vector<8x32xbf16>
    %c0_1 = arith.constant 0 : index
    %c0_2 = arith.constant 0 : index
    %1 = vector.load %arg2[%c0_1, %c0_2] : memref<32x96xbf16, #tpu.memory_space<vmem>>, vector<32x96xbf16>
    %cst = arith.constant dense<0.000000e+00> : vector<8x96xf32>
    %2 = tpu.matmul %0, %1, %cst {dimension_numbers = #tpu.dot_dimension_numbers<[1], [0], [0], [1], [0, 0, 1, 1], [], []>} : vector<8x32xbf16>, vector<32x96xbf16>, vector<8x96xf32> -> vector<8x96xf32>
    %c0_3 = arith.constant 0 : index
    %c0_4 = arith.constant 0 : index
    %3 = vector.load %arg3[%c0_3, %c0_4] : memref<1x96xf32, #tpu.memory_space<vmem>>, vector<1x96xf32>
    %4 = vector.broadcast %3 : vector<1x96xf32> to vector<8x96xf32>
    %5 = arith.addf %2, %4 : vector<8x96xf32>
    %6 = arith.truncf %5 : vector<8x96xf32> to vector<8x96xbf16>
    %c0_5 = arith.constant 0 : index
    %c0_6 = arith.constant 0 : index
    %7 = vector.load %arg4[%c0_5, %c0_6] : memref<8x96xbf16, #tpu.memory_space<vmem>>, vector<8x96xbf16>
    tpu.vector_store %arg4[%c0_5, %c0_6], %6 {strides = array<i32>} : memref<8x96xbf16, #tpu.memory_space<vmem>>, vector<8x96xbf16>,
    return
  }
  func.func @transform_0(%arg0: i32) -> (i32, i32) {
    %c0_i32 = arith.constant 0 : i32
    %c0_i32_0 = arith.constant 0 : i32
    return %arg0, %c0_i32 : i32, i32
  }
  func.func @transform_1(%arg0: i32) -> (i32, i32) {
    %c0_i32 = arith.constant 0 : i32
    %c0_i32_0 = arith.constant 0 : i32
    %c0_i32_1 = arith.constant 0 : i32
    return %c0_i32, %c0_i32_0 : i32, i32
  }
  func.func @transform_2(%arg0: i32) -> (i32, i32) {
    %c0_i32 = arith.constant 0 : i32
    %c0_i32_0 = arith.constant 0 : i32
    %c0_i32_1 = arith.constant 0 : i32
    return %c0_i32, %c0_i32_0 : i32, i32
  }
  func.func @transform_3(%arg0: i32) -> (i32, i32) {
    %c0_i32 = arith.constant 0 : i32
    %c0_i32_0 = arith.constant 0 : i32
    return %arg0, %c0_i32 : i32, i32
  }
}

module attributes {stable_mosaic.version = 11 : i64} {
  func.func @_layernorm_kernel(%arg0: i32, %arg1: memref<8x32xf32, #tpu.memory_space<vmem>>, %arg2: memref<1x32xf32, #tpu.memory_space<vmem>>, %arg3: memref<1x32xf32, #tpu.memory_space<vmem>>, %arg4: memref<8x32xbf16, #tpu.memory_space<vmem>>) attributes {dimension_semantics = [#tpu.dimension_semantics<parallel>], iteration_bounds = array<i64: 2>, scalar_prefetch = 0 : i64, scratch_operands = 0 : i64, tpu.core_type = #tpu.core_type<tc>, window_params = [{transform_indices = @transform_0, window_bounds = array<i64: 8, 32>}, {pipeline_mode = #tpu.pipeline_mode<synchronous>, transform_indices = @transform_1, window_bounds = array<i64: 1, 32>}, {pipeline_mode = #tpu.pipeline_mode<synchronous>, transform_indices = @transform_2, window_bounds = array<i64: 1, 32>}, {transform_indices = @transform_3, window_bounds = array<i64: 8, 32>}]} {
    %c0 = arith.constant 0 : index
    %c0_0 = arith.constant 0 : index
    %0 = vector.load %arg1[%c0, %c0_0] : memref<8x32xf32, #tpu.memory_space<vmem>>, vector<8x32xf32>
    %c0_1 = arith.constant 0 : index
    %c0_2 = arith.constant 0 : index
    %1 = vector.load %arg2[%c0_1, %c0_2] : memref<1x32xf32, #tpu.memory_space<vmem>>, vector<1x32xf32>
    %c0_3 = arith.constant 0 : index
    %c0_4 = arith.constant 0 : index
    %2 = vector.load %arg3[%c0_3, %c0_4] : memref<1x32xf32, #tpu.memory_space<vmem>>, vector<1x32xf32>
    %cst = arith.constant dense<0.000000e+00> : vector<8xf32>
    %3 = vector.multi_reduction <add>, %0, %cst [1] : vector<8x32xf32> to vector<8xf32>
    %4 = vector.shape_cast %3 : vector<8xf32> to vector<8x1xf32>
    %cst_5 = arith.constant 3.200000e+01 : f32
    %5 = vector.broadcast %cst_5 : f32 to vector<8x1xf32>
    %6 = arith.divf %4, %5 : vector<8x1xf32>
    %7 = vector.broadcast %6 : vector<8x1xf32> to vector<8x32xf32>
    %8 = arith.subf %0, %7 : vector<8x32xf32>
    %9 = arith.mulf %8, %8 : vector<8x32xf32>
    %cst_6 = arith.constant dense<0.000000e+00> : vector<8xf32>
    %10 = vector.multi_reduction <add>, %9, %cst_6 [1] : vector<8x32xf32> to vector<8xf32>
    %11 = vector.shape_cast %10 : vector<8xf32> to vector<8x1xf32>
    %cst_7 = arith.constant 3.200000e+01 : f32
    %12 = vector.broadcast %cst_7 : f32 to vector<8x1xf32>
    %13 = arith.divf %11, %12 : vector<8x1xf32>
    %cst_8 = arith.constant 9.99999996E-13 : f32
    %14 = vector.broadcast %cst_8 : f32 to vector<8x1xf32>
    %15 = arith.addf %13, %14 : vector<8x1xf32>
    %16 = math.rsqrt %15 : vector<8x1xf32>
    %17 = vector.broadcast %16 : vector<8x1xf32> to vector<8x32xf32>
    %18 = arith.mulf %8, %17 : vector<8x32xf32>
    %19 = vector.broadcast %1 : vector<1x32xf32> to vector<8x32xf32>
    %20 = arith.mulf %18, %19 : vector<8x32xf32>
    %21 = vector.broadcast %2 : vector<1x32xf32> to vector<8x32xf32>
    %22 = arith.addf %20, %21 : vector<8x32xf32>
    %23 = arith.truncf %22 : vector<8x32xf32> to vector<8x32xbf16>
    %c0_9 = arith.constant 0 : index
    %c0_10 = arith.constant 0 : index
    %24 = vector.load %arg4[%c0_9, %c0_10] : memref<8x32xbf16, #tpu.memory_space<vmem>>, vector<8x32xbf16>
    tpu.vector_store %arg4[%c0_9, %c0_10], %23 {strides = array<i32>} : memref<8x32xbf16, #tpu.memory_space<vmem>>, vector<8x32xbf16>,
    return
  }
  func.func @transform_0(%arg0: i32) -> (i32, i32) {
    %c0_i32 = arith.constant 0 : i32
    %c0_i32_0 = arith.constant 0 : i32
    return %arg0, %c0_i32 : i32, i32
  }
  func.func @transform_1(%arg0: i32) -> (i32, i32) {
    %c0_i32 = arith.constant 0 : i32
    %c0_i32_0 = arith.constant 0 : i32
    %c0_i32_1 = arith.constant 0 : i32
    return %c0_i32, %c0_i32_0 : i32, i32
  }
  func.func @transform_2(%arg0: i32) -> (i32, i32) {
    %c0_i32 = arith.constant 0 : i32
    %c0_i32_0 = arith.constant 0 : i32
    %c0_i32_1 = arith.constant 0 : i32
    return %c0_i32, %c0_i32_0 : i32, i32
  }
  func.func @transform_3(%arg0: i32) -> (i32, i32) {
    %c0_i32 = arith.constant 0 : i32
    %c0_i32_0 = arith.constant 0 : i32
    return %arg0, %c0_i32 : i32, i32
  }
}

module attributes {stable_mosaic.version = 11 : i64} {
  func.func @_linear_res_ln_kernel(%arg0: i32, %arg1: memref<8x32xbf16, #tpu.memory_space<vmem>>, %arg2: memref<8x32xbf16, #tpu.memory_space<vmem>>, %arg3: memref<32x32xbf16, #tpu.memory_space<vmem>>, %arg4: memref<1x32xf32, #tpu.memory_space<vmem>>, %arg5: memref<1x32xf32, #tpu.memory_space<vmem>>, %arg6: memref<1x32xf32, #tpu.memory_space<vmem>>, %arg7: memref<8x32xbf16, #tpu.memory_space<vmem>>) attributes {dimension_semantics = [#tpu.dimension_semantics<parallel>], iteration_bounds = array<i64: 2>, scalar_prefetch = 0 : i64, scratch_operands = 0 : i64, tpu.core_type = #tpu.core_type<tc>, window_params = [{transform_indices = @transform_0, window_bounds = array<i64: 8, 32>}, {transform_indices = @transform_1, window_bounds = array<i64: 8, 32>}, {pipeline_mode = #tpu.pipeline_mode<synchronous>, transform_indices = @transform_2, window_bounds = array<i64: 32, 32>}, {pipeline_mode = #tpu.pipeline_mode<synchronous>, transform_indices = @transform_3, window_bounds = array<i64: 1, 32>}, {pipeline_mode = #tpu.pipeline_mode<synchronous>, transform_indices = @transform_4, window_bounds = array<i64: 1, 32>}, {pipeline_mode = #tpu.pipeline_mode<synchronous>, transform_indices = @transform_5, window_bounds = array<i64: 1, 32>}, {transform_indices = @transform_6, window_bounds = array<i64: 8, 32>}]} {
    %c0 = arith.constant 0 : index
    %c0_0 = arith.constant 0 : index
    %0 = vector.load %arg1[%c0, %c0_0] : memref<8x32xbf16, #tpu.memory_space<vmem>>, vector<8x32xbf16>
    %c0_1 = arith.constant 0 : index
    %c0_2 = arith.constant 0 : index
    %1 = vector.load %arg3[%c0_1, %c0_2] : memref<32x32xbf16, #tpu.memory_space<vmem>>, vector<32x32xbf16>
    %cst = arith.constant dense<0.000000e+00> : vector<8x32xf32>
    %2 = tpu.matmul %0, %1, %cst {dimension_numbers = #tpu.dot_dimension_numbers<[1], [0], [0], [1], [0, 0, 1, 1], [], []>} : vector<8x32xbf16>, vector<32x32xbf16>, vector<8x32xf32> -> vector<8x32xf32>
    %c0_3 = arith.constant 0 : index
    %c0_4 = arith.constant 0 : index
    %3 = vector.load %arg4[%c0_3, %c0_4] : memref<1x32xf32, #tpu.memory_space<vmem>>, vector<1x32xf32>
    %4 = vector.broadcast %3 : vector<1x32xf32> to vector<8x32xf32>
    %5 = arith.addf %2, %4 : vector<8x32xf32>
    %c0_5 = arith.constant 0 : index
    %c0_6 = arith.constant 0 : index
    %6 = vector.load %arg2[%c0_5, %c0_6] : memref<8x32xbf16, #tpu.memory_space<vmem>>, vector<8x32xbf16>
    %7 = arith.extf %6 : vector<8x32xbf16> to vector<8x32xf32>
    %8 = arith.addf %5, %7 : vector<8x32xf32>
    %c0_7 = arith.constant 0 : index
    %c0_8 = arith.constant 0 : index
    %9 = vector.load %arg5[%c0_7, %c0_8] : memref<1x32xf32, #tpu.memory_space<vmem>>, vector<1x32xf32>
    %c0_9 = arith.constant 0 : index
    %c0_10 = arith.constant 0 : index
    %10 = vector.load %arg6[%c0_9, %c0_10] : memref<1x32xf32, #tpu.memory_space<vmem>>, vector<1x32xf32>
    %cst_11 = arith.constant dense<0.000000e+00> : vector<8xf32>
    %11 = vector.multi_reduction <add>, %8, %cst_11 [1] : vector<8x32xf32> to vector<8xf32>
    %12 = vector.shape_cast %11 : vector<8xf32> to vector<8x1xf32>
    %cst_12 = arith.constant 3.200000e+01 : f32
    %13 = vector.broadcast %cst_12 : f32 to vector<8x1xf32>
    %14 = arith.divf %12, %13 : vector<8x1xf32>
    %15 = vector.broadcast %14 : vector<8x1xf32> to vector<8x32xf32>
    %16 = arith.subf %8, %15 : vector<8x32xf32>
    %17 = arith.mulf %16, %16 : vector<8x32xf32>
    %cst_13 = arith.constant dense<0.000000e+00> : vector<8xf32>
    %18 = vector.multi_reduction <add>, %17, %cst_13 [1] : vector<8x32xf32> to vector<8xf32>
    %19 = vector.shape_cast %18 : vector<8xf32> to vector<8x1xf32>
    %cst_14 = arith.constant 3.200000e+01 : f32
    %20 = vector.broadcast %cst_14 : f32 to vector<8x1xf32>
    %21 = arith.divf %19, %20 : vector<8x1xf32>
    %cst_15 = arith.constant 9.99999996E-13 : f32
    %22 = vector.broadcast %cst_15 : f32 to vector<8x1xf32>
    %23 = arith.addf %21, %22 : vector<8x1xf32>
    %24 = math.rsqrt %23 : vector<8x1xf32>
    %25 = vector.broadcast %24 : vector<8x1xf32> to vector<8x32xf32>
    %26 = arith.mulf %16, %25 : vector<8x32xf32>
    %27 = vector.broadcast %9 : vector<1x32xf32> to vector<8x32xf32>
    %28 = arith.mulf %26, %27 : vector<8x32xf32>
    %29 = vector.broadcast %10 : vector<1x32xf32> to vector<8x32xf32>
    %30 = arith.addf %28, %29 : vector<8x32xf32>
    %31 = arith.truncf %30 : vector<8x32xf32> to vector<8x32xbf16>
    %c0_16 = arith.constant 0 : index
    %c0_17 = arith.constant 0 : index
    %32 = vector.load %arg7[%c0_16, %c0_17] : memref<8x32xbf16, #tpu.memory_space<vmem>>, vector<8x32xbf16>
    tpu.vector_store %arg7[%c0_16, %c0_17], %31 {strides = array<i32>} : memref<8x32xbf16, #tpu.memory_space<vmem>>, vector<8x32xbf16>,
    return
  }
  func.func @transform_0(%arg0: i32) -> (i32, i32) {
    %c0_i32 = arith.constant 0 : i32
    %c0_i32_0 = arith.constant 0 : i32
    return %arg0, %c0_i32 : i32, i32
  }
  func.func @transform_1(%arg0: i32) -> (i32, i32) {
    %c0_i32 = arith.constant 0 : i32
    %c0_i32_0 = arith.constant 0 : i32
    return %arg0, %c0_i32 : i32, i32
  }
  func.func @transform_2(%arg0: i32) -> (i32, i32) {
    %c0_i32 = arith.constant 0 : i32
    %c0_i32_0 = arith.constant 0 : i32
    %c0_i32_1 = arith.constant 0 : i32
    return %c0_i32, %c0_i32_0 : i32, i32
  }
  func.func @transform_3(%arg0: i32) -> (i32, i32) {
    %c0_i32 = arith.constant 0 : i32
    %c0_i32_0 = arith.constant 0 : i32
    %c0_i32_1 = arith.constant 0 : i32
    return %c0_i32, %c0_i32_0 : i32, i32
  }
  func.func @transform_4(%arg0: i32) -> (i32, i32) {
    %c0_i32 = arith.constant 0 : i32
    %c0_i32_0 = arith.constant 0 : i32
    %c0_i32_1 = arith.constant 0 : i32
    return %c0_i32, %c0_i32_0 : i32, i32
  }
  func.func @transform_5(%arg0: i32) -> (i32, i32) {
    %c0_i32 = arith.constant 0 : i32
    %c0_i32_0 = arith.constant 0 : i32
    %c0_i32_1 = arith.constant 0 : i32
    return %c0_i32, %c0_i32_0 : i32, i32
  }
  func.func @transform_6(%arg0: i32) -> (i32, i32) {
    %c0_i32 = arith.constant 0 : i32
    %c0_i32_0 = arith.constant 0 : i32
    return %arg0, %c0_i32 : i32, i32
  }
}

module attributes {stable_mosaic.version = 11 : i64} {
  func.func @_ffn_res_ln_kernel(%arg0: i32, %arg1: i32, %arg2: memref<8x32xbf16, #tpu.memory_space<vmem>>, %arg3: memref<32x128xbf16, #tpu.memory_space<vmem>>, %arg4: memref<1x128xf32, #tpu.memory_space<vmem>>, %arg5: memref<128x32xbf16, #tpu.memory_space<vmem>>, %arg6: memref<1x32xf32, #tpu.memory_space<vmem>>, %arg7: memref<1x32xf32, #tpu.memory_space<vmem>>, %arg8: memref<1x32xf32, #tpu.memory_space<vmem>>, %arg9: memref<8x32xbf16, #tpu.memory_space<vmem>>, %arg10: memref<8x32xf32, #tpu.memory_space<vmem>>) attributes {dimension_semantics = [#tpu.dimension_semantics<parallel>, #tpu.dimension_semantics<arbitrary>], iteration_bounds = array<i64: 2, 1>, scalar_prefetch = 0 : i64, scratch_operands = 1 : i64, tpu.core_type = #tpu.core_type<tc>, window_params = [{transform_indices = @transform_0, window_bounds = array<i64: 8, 32>}, {transform_indices = @transform_1, window_bounds = array<i64: 32, 128>}, {transform_indices = @transform_2, window_bounds = array<i64: 1, 128>}, {transform_indices = @transform_3, window_bounds = array<i64: 128, 32>}, {pipeline_mode = #tpu.pipeline_mode<synchronous>, transform_indices = @transform_4, window_bounds = array<i64: 1, 32>}, {pipeline_mode = #tpu.pipeline_mode<synchronous>, transform_indices = @transform_5, window_bounds = array<i64: 1, 32>}, {pipeline_mode = #tpu.pipeline_mode<synchronous>, transform_indices = @transform_6, window_bounds = array<i64: 1, 32>}, {transform_indices = @transform_7, window_bounds = array<i64: 8, 32>}]} {
    %c0_i32 = arith.constant 0 : i32
    %0 = arith.cmpi eq, %arg1, %c0_i32 : i32
    %1 = arith.extui %0 : i1 to i32
    %c0_i32_0 = arith.constant 0 : i32
    %2 = arith.cmpi ne, %1, %c0_i32_0 : i32
    scf.if %2 {
      %cst_18 = arith.constant 0.000000e+00 : f32
      %26 = vector.broadcast %cst_18 : f32 to vector<8x32xf32>
      %c0_19 = arith.constant 0 : index
      %c0_20 = arith.constant 0 : index
      %27 = vector.load %arg10[%c0_19, %c0_20] : memref<8x32xf32, #tpu.memory_space<vmem>>, vector<8x32xf32>
      tpu.vector_store %arg10[%c0_19, %c0_20], %26 {strides = array<i32>} : memref<8x32xf32, #tpu.memory_space<vmem>>, vector<8x32xf32>,
    } else {
    }
    %c0 = arith.constant 0 : index
    %c0_1 = arith.constant 0 : index
    %3 = vector.load %arg2[%c0, %c0_1] : memref<8x32xbf16, #tpu.memory_space<vmem>>, vector<8x32xbf16>
    %c0_2 = arith.constant 0 : index
    %c0_3 = arith.constant 0 : index
    %4 = vector.load %arg3[%c0_2, %c0_3] : memref<32x128xbf16, #tpu.memory_space<vmem>>, vector<32x128xbf16>
    %cst = arith.constant dense<0.000000e+00> : vector<8x128xf32>
    %5 = tpu.matmul %3, %4, %cst {dimension_numbers = #tpu.dot_dimension_numbers<[1], [0], [0], [1], [0, 0, 1, 1], [], []>} : vector<8x32xbf16>, vector<32x128xbf16>, vector<8x128xf32> -> vector<8x128xf32>
    %c0_4 = arith.constant 0 : index
    %c0_5 = arith.constant 0 : index
    %6 = vector.load %arg4[%c0_4, %c0_5] : memref<1x128xf32, #tpu.memory_space<vmem>>, vector<1x128xf32>
    %7 = vector.broadcast %6 : vector<1x128xf32> to vector<8x128xf32>
    %8 = arith.addf %5, %7 : vector<8x128xf32>
    %cst_6 = arith.constant 5.000000e-01 : f32
    %9 = vector.broadcast %cst_6 : f32 to vector<8x128xf32>
    %10 = arith.mulf %9, %8 : vector<8x128xf32>
    %cst_7 = arith.constant 0.707106769 : f32
    %11 = vector.broadcast %cst_7 : f32 to vector<8x128xf32>
    %12 = arith.mulf %8, %11 : vector<8x128xf32>
    %13 = math.erf %12 : vector<8x128xf32>
    %cst_8 = arith.constant 1.000000e+00 : f32
    %14 = vector.broadcast %cst_8 : f32 to vector<8x128xf32>
    %15 = arith.addf %14, %13 : vector<8x128xf32>
    %16 = arith.mulf %10, %15 : vector<8x128xf32>
    %c0_9 = arith.constant 0 : index
    %c0_10 = arith.constant 0 : index
    %17 = vector.load %arg10[%c0_9, %c0_10] : memref<8x32xf32, #tpu.memory_space<vmem>>, vector<8x32xf32>
    %18 = arith.truncf %16 : vector<8x128xf32> to vector<8x128xbf16>
    %c0_11 = arith.constant 0 : index
    %c0_12 = arith.constant 0 : index
    %19 = vector.load %arg5[%c0_11, %c0_12] : memref<128x32xbf16, #tpu.memory_space<vmem>>, vector<128x32xbf16>
    %cst_13 = arith.constant dense<0.000000e+00> : vector<8x32xf32>
    %20 = tpu.matmul %18, %19, %cst_13 {dimension_numbers = #tpu.dot_dimension_numbers<[1], [0], [0], [1], [0, 0, 1, 1], [], []>} : vector<8x128xbf16>, vector<128x32xbf16>, vector<8x32xf32> -> vector<8x32xf32>
    %21 = arith.addf %17, %20 : vector<8x32xf32>
    %c0_14 = arith.constant 0 : index
    %c0_15 = arith.constant 0 : index
    %22 = vector.load %arg10[%c0_14, %c0_15] : memref<8x32xf32, #tpu.memory_space<vmem>>, vector<8x32xf32>
    tpu.vector_store %arg10[%c0_14, %c0_15], %21 {strides = array<i32>} : memref<8x32xf32, #tpu.memory_space<vmem>>, vector<8x32xf32>,
    %c0_i32_16 = arith.constant 0 : i32
    %23 = arith.cmpi eq, %arg1, %c0_i32_16 : i32
    %24 = arith.extui %23 : i1 to i32
    %c0_i32_17 = arith.constant 0 : i32
    %25 = arith.cmpi ne, %24, %c0_i32_17 : i32
    scf.if %25 {
      %c0_18 = arith.constant 0 : index
      %c0_19 = arith.constant 0 : index
      %26 = vector.load %arg10[%c0_18, %c0_19] : memref<8x32xf32, #tpu.memory_space<vmem>>, vector<8x32xf32>
      %c0_20 = arith.constant 0 : index
      %c0_21 = arith.constant 0 : index
      %27 = vector.load %arg6[%c0_20, %c0_21] : memref<1x32xf32, #tpu.memory_space<vmem>>, vector<1x32xf32>
      %28 = vector.broadcast %27 : vector<1x32xf32> to vector<8x32xf32>
      %29 = arith.addf %26, %28 : vector<8x32xf32>
      %c0_22 = arith.constant 0 : index
      %c0_23 = arith.constant 0 : index
      %30 = vector.load %arg2[%c0_22, %c0_23] : memref<8x32xbf16, #tpu.memory_space<vmem>>, vector<8x32xbf16>
      %31 = arith.extf %30 : vector<8x32xbf16> to vector<8x32xf32>
      %32 = arith.addf %29, %31 : vector<8x32xf32>
      %c0_24 = arith.constant 0 : index
      %c0_25 = arith.constant 0 : index
      %33 = vector.load %arg7[%c0_24, %c0_25] : memref<1x32xf32, #tpu.memory_space<vmem>>, vector<1x32xf32>
      %c0_26 = arith.constant 0 : index
      %c0_27 = arith.constant 0 : index
      %34 = vector.load %arg8[%c0_26, %c0_27] : memref<1x32xf32, #tpu.memory_space<vmem>>, vector<1x32xf32>
      %cst_28 = arith.constant dense<0.000000e+00> : vector<8xf32>
      %35 = vector.multi_reduction <add>, %32, %cst_28 [1] : vector<8x32xf32> to vector<8xf32>
      %36 = vector.shape_cast %35 : vector<8xf32> to vector<8x1xf32>
      %cst_29 = arith.constant 3.200000e+01 : f32
      %37 = vector.broadcast %cst_29 : f32 to vector<8x1xf32>
      %38 = arith.divf %36, %37 : vector<8x1xf32>
      %39 = vector.broadcast %38 : vector<8x1xf32> to vector<8x32xf32>
      %40 = arith.subf %32, %39 : vector<8x32xf32>
      %41 = arith.mulf %40, %40 : vector<8x32xf32>
      %cst_30 = arith.constant dense<0.000000e+00> : vector<8xf32>
      %42 = vector.multi_reduction <add>, %41, %cst_30 [1] : vector<8x32xf32> to vector<8xf32>
      %43 = vector.shape_cast %42 : vector<8xf32> to vector<8x1xf32>
      %cst_31 = arith.constant 3.200000e+01 : f32
      %44 = vector.broadcast %cst_31 : f32 to vector<8x1xf32>
      %45 = arith.divf %43, %44 : vector<8x1xf32>
      %cst_32 = arith.constant 9.99999996E-13 : f32
      %46 = vector.broadcast %cst_32 : f32 to vector<8x1xf32>
      %47 = arith.addf %45, %46 : vector<8x1xf32>
      %48 = math.rsqrt %47 : vector<8x1xf32>
      %49 = vector.broadcast %48 : vector<8x1xf32> to vector<8x32xf32>
      %50 = arith.mulf %40, %49 : vector<8x32xf32>
      %51 = vector.broadcast %33 : vector<1x32xf32> to vector<8x32xf32>
      %52 = arith.mulf %50, %51 : vector<8x32xf32>
      %53 = vector.broadcast %34 : vector<1x32xf32> to vector<8x32xf32>
      %54 = arith.addf %52, %53 : vector<8x32xf32>
      %55 = arith.truncf %54 : vector<8x32xf32> to vector<8x32xbf16>
      %c0_33 = arith.constant 0 : index
      %c0_34 = arith.constant 0 : index
      %56 = vector.load %arg9[%c0_33, %c0_34] : memref<8x32xbf16, #tpu.memory_space<vmem>>, vector<8x32xbf16>
      tpu.vector_store %arg9[%c0_33, %c0_34], %55 {strides = array<i32>} : memref<8x32xbf16, #tpu.memory_space<vmem>>, vector<8x32xbf16>,
    } else {
    }
    return
  }
  func.func @transform_0(%arg0: i32, %arg1: i32) -> (i32, i32) {
    %c0_i32 = arith.constant 0 : i32
    %c0_i32_0 = arith.constant 0 : i32
    return %arg0, %c0_i32 : i32, i32
  }
  func.func @transform_1(%arg0: i32, %arg1: i32) -> (i32, i32) {
    %c0_i32 = arith.constant 0 : i32
    %c0_i32_0 = arith.constant 0 : i32
    return %c0_i32, %arg1 : i32, i32
  }
  func.func @transform_2(%arg0: i32, %arg1: i32) -> (i32, i32) {
    %c0_i32 = arith.constant 0 : i32
    %c0_i32_0 = arith.constant 0 : i32
    return %c0_i32, %arg1 : i32, i32
  }
  func.func @transform_3(%arg0: i32, %arg1: i32) -> (i32, i32) {
    %c0_i32 = arith.constant 0 : i32
    %c0_i32_0 = arith.constant 0 : i32
    return %arg1, %c0_i32 : i32, i32
  }
  func.func @transform_4(%arg0: i32, %arg1: i32) -> (i32, i32) {
    %c0_i32 = arith.constant 0 : i32
    %c0_i32_0 = arith.constant 0 : i32
    %c0_i32_1 = arith.constant 0 : i32
    return %c0_i32, %c0_i32_0 : i32, i32
  }
  func.func @transform_5(%arg0: i32, %arg1: i32) -> (i32, i32) {
    %c0_i32 = arith.constant 0 : i32
    %c0_i32_0 = arith.constant 0 : i32
    %c0_i32_1 = arith.constant 0 : i32
    return %c0_i32, %c0_i32_0 : i32, i32
  }
  func.func @transform_6(%arg0: i32, %arg1: i32) -> (i32, i32) {
    %c0_i32 = arith.constant 0 : i32
    %c0_i32_0 = arith.constant 0 : i32
    %c0_i32_1 = arith.constant 0 : i32
    return %c0_i32, %c0_i32_0 : i32, i32
  }
  func.func @transform_7(%arg0: i32, %arg1: i32) -> (i32, i32) {
    %c0_i32 = arith.constant 0 : i32
    %c0_i32_0 = arith.constant 0 : i32
    return %arg0, %c0_i32 : i32, i32
  }
}

module attributes {stable_mosaic.version = 11 : i64} {
  func.func @_head_kernel(%arg0: i32, %arg1: memref<8x32xbf16, #tpu.memory_space<vmem>>, %arg2: memref<32x32xbf16, #tpu.memory_space<vmem>>, %arg3: memref<1x32xf32, #tpu.memory_space<vmem>>, %arg4: memref<32x128xbf16, #tpu.memory_space<vmem>>, %arg5: memref<1x128xf32, #tpu.memory_space<vmem>>, %arg6: memref<8x128xf32, #tpu.memory_space<vmem>>) attributes {dimension_semantics = [#tpu.dimension_semantics<parallel>], iteration_bounds = array<i64: 1>, scalar_prefetch = 0 : i64, scratch_operands = 0 : i64, tpu.core_type = #tpu.core_type<tc>, window_params = [{transform_indices = @transform_0, window_bounds = array<i64: 8, 32>}, {pipeline_mode = #tpu.pipeline_mode<synchronous>, transform_indices = @transform_1, window_bounds = array<i64: 32, 32>}, {pipeline_mode = #tpu.pipeline_mode<synchronous>, transform_indices = @transform_2, window_bounds = array<i64: 1, 32>}, {pipeline_mode = #tpu.pipeline_mode<synchronous>, transform_indices = @transform_3, window_bounds = array<i64: 32, 128>}, {pipeline_mode = #tpu.pipeline_mode<synchronous>, transform_indices = @transform_4, window_bounds = array<i64: 1, 128>}, {transform_indices = @transform_5, window_bounds = array<i64: 8, 128>}]} {
    %c0 = arith.constant 0 : index
    %c0_0 = arith.constant 0 : index
    %0 = vector.load %arg1[%c0, %c0_0] : memref<8x32xbf16, #tpu.memory_space<vmem>>, vector<8x32xbf16>
    %c0_1 = arith.constant 0 : index
    %c0_2 = arith.constant 0 : index
    %1 = vector.load %arg2[%c0_1, %c0_2] : memref<32x32xbf16, #tpu.memory_space<vmem>>, vector<32x32xbf16>
    %cst = arith.constant dense<0.000000e+00> : vector<8x32xf32>
    %2 = tpu.matmul %0, %1, %cst {dimension_numbers = #tpu.dot_dimension_numbers<[1], [0], [0], [1], [0, 0, 1, 1], [], []>} : vector<8x32xbf16>, vector<32x32xbf16>, vector<8x32xf32> -> vector<8x32xf32>
    %c0_3 = arith.constant 0 : index
    %c0_4 = arith.constant 0 : index
    %3 = vector.load %arg3[%c0_3, %c0_4] : memref<1x32xf32, #tpu.memory_space<vmem>>, vector<1x32xf32>
    %4 = vector.broadcast %3 : vector<1x32xf32> to vector<8x32xf32>
    %5 = arith.addf %2, %4 : vector<8x32xf32>
    %cst_5 = arith.constant 0.000000e+00 : f32
    %6 = vector.broadcast %cst_5 : f32 to vector<8x32xf32>
    %7 = arith.maximumf %5, %6 : vector<8x32xf32>
    %8 = arith.truncf %7 : vector<8x32xf32> to vector<8x32xbf16>
    %c0_6 = arith.constant 0 : index
    %c0_7 = arith.constant 0 : index
    %9 = vector.load %arg4[%c0_6, %c0_7] : memref<32x128xbf16, #tpu.memory_space<vmem>>, vector<32x128xbf16>
    %cst_8 = arith.constant dense<0.000000e+00> : vector<8x128xf32>
    %10 = tpu.matmul %8, %9, %cst_8 {dimension_numbers = #tpu.dot_dimension_numbers<[1], [0], [0], [1], [0, 0, 1, 1], [], []>} : vector<8x32xbf16>, vector<32x128xbf16>, vector<8x128xf32> -> vector<8x128xf32>
    %c0_9 = arith.constant 0 : index
    %c0_10 = arith.constant 0 : index
    %11 = vector.load %arg5[%c0_9, %c0_10] : memref<1x128xf32, #tpu.memory_space<vmem>>, vector<1x128xf32>
    %12 = vector.broadcast %11 : vector<1x128xf32> to vector<8x128xf32>
    %13 = arith.addf %10, %12 : vector<8x128xf32>
    %c0_11 = arith.constant 0 : index
    %c0_12 = arith.constant 0 : index
    %14 = vector.load %arg6[%c0_11, %c0_12] : memref<8x128xf32, #tpu.memory_space<vmem>>, vector<8x128xf32>
    tpu.vector_store %arg6[%c0_11, %c0_12], %13 {strides = array<i32>} : memref<8x128xf32, #tpu.memory_space<vmem>>, vector<8x128xf32>,
    return
  }
  func.func @transform_0(%arg0: i32) -> (i32, i32) {
    %c0_i32 = arith.constant 0 : i32
    %c0_i32_0 = arith.constant 0 : i32
    return %arg0, %c0_i32 : i32, i32
  }
  func.func @transform_1(%arg0: i32) -> (i32, i32) {
    %c0_i32 = arith.constant 0 : i32
    %c0_i32_0 = arith.constant 0 : i32
    %c0_i32_1 = arith.constant 0 : i32
    return %c0_i32, %c0_i32_0 : i32, i32
  }
  func.func @transform_2(%arg0: i32) -> (i32, i32) {
    %c0_i32 = arith.constant 0 : i32
    %c0_i32_0 = arith.constant 0 : i32
    %c0_i32_1 = arith.constant 0 : i32
    return %c0_i32, %c0_i32_0 : i32, i32
  }
  func.func @transform_3(%arg0: i32) -> (i32, i32) {
    %c0_i32 = arith.constant 0 : i32
    %c0_i32_0 = arith.constant 0 : i32
    %c0_i32_1 = arith.constant 0 : i32
    return %c0_i32, %c0_i32_0 : i32, i32
  }
  func.func @transform_4(%arg0: i32) -> (i32, i32) {
    %c0_i32 = arith.constant 0 : i32
    %c0_i32_0 = arith.constant 0 : i32
    %c0_i32_1 = arith.constant 0 : i32
    return %c0_i32, %c0_i32_0 : i32, i32
  }
  func.func @transform_5(%arg0: i32) -> (i32, i32) {
    %c0_i32 = arith.constant 0 : i32
    %c0_i32_0 = arith.constant 0 : i32
    return %arg0, %c0_i32 : i32, i32
  }
}

</mosaic_0001>

<bundles_post_ra>
// kernel: tpu_custom_call.1
= control target key start
LH: loop header
LB: loop body
LE: loop exit
PB: predicated region body
PF: predicated region fallthrough
CT: control target
= control target key end

     0   :  { %6 = vsyncpa [#allocation3], 0  ;;  %s115_s0 = inlined_call_operand.hbm [shape: f32[8,128], index: 0, kind: input, shape index: {}]   ;;  %s116_s1 = inlined_call_operand.hbm [shape: f32[8,128], index: 1, kind: output, shape index: {}]  }
   0x1   :  { %7 = vsyncpa [#allocation4], 0  ;;  %s13_s8 = sshll.u32 %s115_s0, 4  ;;  %s97_s9 = smov [#allocation2]   ;;  %s14_s8 = int_to_ptr.hbm [resolvable:$true] %s13_s8 }
   0x2   :  { %s15_s10 = sshll.u32 %s97_s9, 4  ;;  %s16_s10 = int_to_ptr.vmem [resolvable:$true] %s15_s10 }
   0x3   :  { %18 = dma.hbm_to_vmem [thread:$0]  %s14_s8, 128, %s16_s10, [#allocation3]  }
   0x4   :  { %93 = dma.done.wait [#allocation3], 128  }
   0x5   :  { %94 = vsyncadd [#allocation3], 4294967168  ;;  %s98_s11 = smov [#allocation5]   ;;  %s33_s15 = sshll.u32 %s116_s1, 4  ;;  %v23_v0 = vld [vmem:[#allocation2] sm:$0xff]  ;;  %s34_s15 = int_to_ptr.hbm [resolvable:$true] %s33_s15 }
   0x6   :  { %s31_s12 = sshll.u32 %s98_s11, 4  ;;  %v24_v1 = vadd.f32 1.0, %v23_v0  ;;  %s32_s12 = int_to_ptr.vmem [resolvable:$true] %s31_s12 }
   0x8   :  { %25 = vst [vmem:[#allocation5] sm:$0xff] %v24_v1 }
   0x9   :  { %36 = dma.vmem_to_hbm [thread:$0]  %s32_s12, 128, %s34_s15, [#allocation4]  }
   0xa   :  { %95 = dma.done.wait [#allocation4], 128  }
   0xb   :  { %96 = vsyncadd [#allocation4], 4294967168 }
   0xc   :  { %41 = vsyncpa [#allocation3], 1 }
   0xd   :  { %42 = vsyncpa [#allocation4], 1 }

// kernel: distilbert_class_forward.12
= control target key start
LH: loop header
LB: loop body
LE: loop exit
PB: predicated region body
PF: predicated region fallthrough
CT: control target
= control target key end

     0   :  { %s414_s9 = smov 0   ;;  %s453_s0 = inlined_call_operand.vmem [shape: bf16[2,8,96], index: 0, kind: input, shape index: {}]   ;;  %s454_s1 = inlined_call_operand.vmem [shape: f32[2,1,8], index: 1, kind: input, shape index: {}]   ;;  %s455_s2 = inlined_call_operand.vmem [shape: bf16[2,8,32], index: 2, kind: output, shape index: {}]  }
   0x1 LB: > { %s349_s10 = sadd.s32 4294967295, %s391_s9   ;;  %p353_p0 = scmp.ge.s32.totalorder %s391_s9, 1  ;;  %s391_s9 = sphi %s414_s9, %s12_s9  }
   0x2   : > { %p119_p1 = scmp.lt.s32.totalorder %s391_s9, 3 }
   0x4   : > { %p120_p2 = pnand %p353_p0, %p119_p1 }
   0x5   : > { %p142_p3 = scmp.lt.s32.totalorder (!%p120_p2), %s349_s10, 1  ;;  %s393_s18 = smov (!%p120_p2), 80  }
   0x6   : > { %123 = sbr.rel (%p120_p2) target bundleno = 759 (0x2f7), region = 28  ;;  %s394_s19 = smov (!%p120_p2), 96  }
   0x7   : > { %s395_s20 = smov (!%p120_p2), 112   ;;  %s396_s21 = smov (!%p120_p2), 48  }
   0x8   : > { %s397_s22 = smov (!%p120_p2), 64   ;;  %s398_s23 = smov (!%p120_p2), 16  }
   0xb   : > { %s457_s10 = smov (!%p142_p3, %s349_s10), 1  ;;  %vm164_vm0 = vcmask 130048   ;;  %vm184_vm1 = vcmask 64512   ;;  %vm202_vm2 = vcmask 1043456   ;;  %vm285_vm3 = vcmask 257024  }
   0xc   : > { %s354_s11 = sshll.u32 %s457_s10, 2  ;;  %s148_s17 = scalar_lea.vmem %s454_s1, %s457_s10 }
   0xd   : > { %s145_s14 = scalar_lea.vmem %s453_s0, %s354_s11  ;;  %v376_v11 = vld [vmem:[%s148_s17] ss:$0 sm:$0xff]  ;;  %s152_s26 = scalar_lea.vmem %s455_s2, %s354_s11 }
   0xe   : > { %v219_v0 = vld [vmem:[%s145_s14] sm:$0xf] }
   0xf   : > { %v155_v1 = vld [vmem:[%s145_s14] sm:$0xf]  ;;  %v221_v2 = vunpack.c.l.b16 %v219_v0 }
  0x10   : > { %v160_v3 = vunpack.c.l.b16 %v155_v1 }
  0x11   : > { %v222_v4 = vpack.c.b16 %v221_v2, %v221_v2 }
  0x12   : > { %v161_v5 = vpack.c.b16 %v160_v3, %v160_v3 }
  0x13   : > { %225 = vrot.lane.b32.xlu0 %v222_v4, %s393_s18 }
  0x14   : > { %162 = vrot.lane.b32.xlu1 %v161_v5, %s394_s19 }
  0x1b   : > { %223 = vrot.lane.b32.xlu0 %v222_v4, %s395_s20 }
  0x23   : > { %258 = vrot.lane.b32.xlu0 %v222_v4, %s396_s21 }
  0x2b   : > { %197 = vrot.lane.b32.xlu0 %v161_v5, %s397_s22 }
  0x85   : > { %v226_v6 = vpop.permute.xlu0 %225 }
  0x86   : > { %v163_v7 = vpop.permute.xlu1 %162  ;;  %v231_v9 = vsel %vm164_vm0, %v226_v6, 0 }
  0x87   : > { %v169_v8 = vsel %vm164_vm0, %v163_v7, 0  ;;  %240 = vmatpush.bf16.xpose.msra.mxu2 %v231_v9 }
  0x88   : > { %178 = vmatpush.bf16.xpose.msra.mxu0 %v169_v8 }
  0x8d   : > { %v224_v10 = vpop.permute.xlu0 %223 }
  0x8e   : > { %358 = vmatmul.msk.bf16.vlgmr.msra.gmra.mxu2 %vm164_vm0, %v224_v10 }
  0x8f   : > { %356 = vmatmul.msk.bf16.vlgmr.msra.gmra.mxu0 %vm164_vm0, %v155_v1 }
  0x95   : > { %v259_v30 = vpop.permute.xlu0 %258 }
  0x96   : > { %v264_v31 = vsel %vm202_vm2, %v259_v30, 0 }
  0x97   : > { %273 = vmatpush.bf16.msra.mxu3 %v264_v31 }
  0x9d   : > { %v198_v32 = vpop.permute.xlu0 %197 }
  0x9e   : > { %v204_v33 = vsel %vm202_vm2, %v198_v32, 0 }
  0x9f   : > { %213 = vmatpush.bf16.msra.mxu1 %v204_v33 }
 0x10c   : > { %v180_v12 = vpop.f32.mrf.mxu0 }
 0x10d   : > { %v181_v13 = vadd.f32 %v376_v11, %v180_v12 }
 0x10f   : > { %v185_v14 = vsel %vm184_vm1, %v181_v13, -inf }
 0x110   : > { %186 = vmax.xlane.f32.xlu2 %v185_v14 }
 0x111   : > { %v242_v15 = vpop.f32.mrf.mxu2 }
 0x112   : > { %v243_v16 = vadd.f32 %v376_v11, %v242_v15 }
 0x114   : > { %v182_v17 = vpop.f32.mrf.mxu0  ;;  %v246_v18 = vsel %vm184_vm1, %v243_v16, -inf }
 0x115   : > { %247 = vmax.xlane.f32.xlu1 %v246_v18 }
 0x119   : > { %v244_v19 = vpop.f32.mrf.mxu2 }
 0x183   : > { %v187_v20 = vpop.xlane.xlu2 %186 }
 0x184   : > { %v188_v23 = vsub.f32 %v181_v13, %v187_v20 }
 0x186   : > { %v189_v25 = vmul.f32 1.442695, %v188_v23 }
 0x188   : > { %v248_v21 = vpop.xlane.xlu1 %247 }
 0x189   : > { %v249_v22 = vsub.f32 %v243_v16, %v248_v21 }
 0x18b   : > { %v250_v24 = vmul.f32 1.442695, %v249_v22 }
 0x18d   : > { %377 = vpow2.f32 %v250_v24 }
 0x18e   : > { %379 = vpow2.f32 %v189_v25 }
 0x193   : > { %v378_v26 = vpop.eup %377 }
 0x194   : > { %v252_v27 = vsel %vm184_vm1, %v378_v26, 0.0  ;;  %v380_v28 = vpop.eup %379 }
 0x195   : > { %253 = vadd.xlane.f32.xlu2 %v252_v27  ;;  %v191_v29 = vsel %vm184_vm1, %v380_v28, 0.0 }
 0x19d   : > { %192 = vadd.xlane.f32.xlu2 %v191_v29 }
 0x208   : > { %v254_v34 = vpop.xlane.xlu2 %253 }
 0x209   : > { %381 = vrcp.f32 %v254_v34 }
 0x20f   : > { %v382_v35 = vpop.eup %381 }
 0x210   : > { %v193_v36 = vpop.xlane.xlu2 %192  ;;  %v256_v37 = vmul.f32 %v382_v35, %v378_v26 }
 0x211   : > { %383 = vrcp.f32 %v193_v36 }
 0x212   : > { %v257_v38 = vpack.c.bf16 %v256_v37, %v256_v37 }
 0x214   : > { %359 = vmatmul.msk.bf16.vlgmr.msra.gmra.mxu3 %vm184_vm1, %v257_v38 }
 0x217   : > { %v384_v39 = vpop.eup %383 }
 0x218   : > { %v195_v40 = vmul.f32 %v384_v39, %v380_v28 }
 0x21a   : > { %v196_v41 = vpack.c.bf16 %v195_v40, %v195_v40 }
 0x21c   : > { %357 = vmatmul.msk.bf16.vlgmr.msra.gmra.mxu1 %vm184_vm1, %v196_v41 }
 0x297   : > { %v275_v42 = vpop.f32.mrf.mxu3 }
 0x298   : > { %280 = vrot.lane.b32.xlu2 %v275_v42, %s398_s23 }
 0x299   : > { %v215_v43 = vpop.f32.mrf.mxu1 }
 0x29f   : > { %v277_v44 = vpop.f32.mrf.mxu3 }
 0x2a1   : > { %v217_v45 = vpop.f32.mrf.mxu1 }
 0x2f2   : > { %v281_v46 = vpop.permute.xlu2 %280 }
 0x2f3   : > { %v283_v47 = vsel %vm164_vm0, %v215_v43, %v281_v46 }
 0x2f4   : > { %v284_v48 = vpack.c.bf16 %v283_v47, %v283_v47 }
 0x2f6   : > { %286 = vst.msk [vmem:[%s152_s26] sm:$0xf] %vm285_vm3, %v284_v48 }
 0x2f7 PF: > { %s12_s9 = sadd.s32 1, %s391_s9  }
 0x2f8   : > { %p9_p4 = scmp.ge.s32.totalorder %s12_s9, 4  }
 0x2fa   :  { %11 = sbr.rel (!%p9_p4) target bundleno = 1 (0x1), region = 61 }

// kernel: distilbert_class_forward.11
= control target key start
LH: loop header
LB: loop body
LE: loop exit
PB: predicated region body
PF: predicated region fallthrough
CT: control target
= control target key end

     0   :  { %s318_s12 = smov 0   ;;  %s338_s0 = inlined_call_operand.vmem [shape: bf16[16,32], index: 0, kind: input, shape index: {}]   ;;  %s339_s1 = inlined_call_operand.vmem [shape: bf16[32,96], index: 1, kind: input, shape index: {}]   ;;  %s340_s2 = inlined_call_operand.vmem [shape: f32[1,96], index: 2, kind: input, shape index: {}]   ;;  %s341_s3 = inlined_call_operand.vmem [shape: bf16[16,96], index: 3, kind: output, shape index: {}]  }
   0x1 LB: > { %s261_s13 = sadd.s32 4294967295, %s296_s12   ;;  %p265_p0 = scmp.ge.s32.totalorder %s296_s12, 1  ;;  %s296_s12 = sphi %s318_s12, %s13_s12  }
   0x2   : > { %p136_p1 = scmp.lt.s32.totalorder %s296_s12, 3 }
   0x4   : > { %p137_p2 = pnand %p265_p0, %p136_p1 }
   0x5   : > { %p158_p3 = scmp.lt.s32.totalorder (!%p137_p2), %s261_s13, 1 }
   0x6   : > { %140 = sbr.rel (%p137_p2) target bundleno = 153 (0x99), region = 32 }
   0xb   : > { %v280_v0 = vld [vmem:[%s339_s1 + $0x8] sm:$0xff]  ;;  %v279_v1 = vld [vmem:[%s339_s1] sm:$0xff]  ;;  %s343_s13 = smov (!%p158_p3, %s261_s13), 1  ;;  %vm188_vm0 = vcmask 261120   ;;  %vm206_vm1 = vcmask 781312  }
   0xc   : > { %198 = vmatpush.bf16.msra.mxu0 %v280_v0  ;;  %s266_s18 = sshll.u32 %s343_s13, 2  ;;  %v289_v3 = vld [vmem:[%s340_s2] ss:$0 sm:$0xff] }
   0xd   : > { %s161_s21 = scalar_lea.vmem %s338_s0, %s266_s18  ;;  %s165_s26 = scalar_lea.vmem %s341_s3, %s266_s18 }
   0xe   : > { %v167_v2 = vld [vmem:[%s161_s21] sm:$0xf] }
  0x10   : > { %199 = vmatpush.bf16.msra.mxu0 %v279_v1 }
  0x13   : > { %276 = vmatmul.msk.bf16.vlgmr.msra.gmra.mxu0 %vm188_vm0, %v167_v2 }
  0x90   : > { %v201_v4 = vpop.f32.mrf.mxu0 }
  0x91   : > { %v202_v5 = vadd.f32 %v289_v3, %v201_v4 }
  0x93   : > { %v205_v6 = vpack.c.bf16 %v202_v5, %v202_v5 }
  0x95   : > { %207 = vst.msk [vmem:[%s165_s26] sm:$0xf] %vm206_vm1, %v205_v6 }
  0x98   : > { %v203_v7 = vpop.f32.mrf.mxu0 }
  0x99 PF: > { %s13_s12 = sadd.s32 1, %s296_s12  }
  0x9a   : > { %p10_p4 = scmp.ge.s32.totalorder %s13_s12, 4  }
  0x9c   :  { %12 = sbr.rel (!%p10_p4) target bundleno = 1 (0x1), region = 62 }

// kernel: distilbert_class_forward.10
= control target key start
LH: loop header
LB: loop body
LE: loop exit
PB: predicated region body
PF: predicated region fallthrough
CT: control target
= control target key end

     0   :  { %s316_s12 = smov 0   ;;  %s345_s0 = inlined_call_operand.vmem [shape: f32[16,32], index: 0, kind: input, shape index: {}]   ;;  %s346_s1 = inlined_call_operand.vmem [shape: f32[1,32], index: 1, kind: input, shape index: {}]   ;;  %s347_s2 = inlined_call_operand.vmem [shape: f32[1,32], index: 2, kind: input, shape index: {}]   ;;  %s348_s3 = inlined_call_operand.vmem [shape: bf16[16,32], index: 3, kind: output, shape index: {}]  }
   0x1 LB: > { %s263_s13 = sadd.s32 4294967295, %s293_s12   ;;  %p267_p0 = scmp.ge.s32.totalorder %s293_s12, 1  ;;  %s293_s12 = sphi %s316_s12, %s13_s12  }
   0x2   : > { %p136_p1 = scmp.lt.s32.totalorder %s293_s12, 3 }
   0x4   : > { %p137_p2 = pnand %p267_p0, %p136_p1 }
   0x5   : > { %p158_p3 = scmp.lt.s32.totalorder (!%p137_p2), %s263_s13, 1 }
   0x6   : > { %140 = sbr.rel (%p137_p2) target bundleno = 286 (0x11e), region = 32 }
   0xb   : > { %s350_s13 = smov (!%p158_p3, %s263_s13), 1  ;;  %vm169_vm0 = vcmask 261120   ;;  %v295_v2 = vmov 32.0   ;;  %v281_v23 = vld [vmem:[%s346_s1] ss:$0 sm:$0xff]  ;;  %vm208_vm5 = vcmask 257024  }
   0xc   : > { %s268_s14 = sshll.u32 %s350_s13, 3  ;;  %283 = vrcp.f32 %v295_v2  ;;  %v282_v25 = vld [vmem:[%s347_s2] ss:$0 sm:$0xff]  ;;  %s269_s22 = sshll.u32 %s350_s13, 2 }
   0xd   : > { %s161_s17 = scalar_lea.vmem %s345_s0, %s268_s14  ;;  %s165_s25 = scalar_lea.vmem %s348_s3, %s269_s22 }
   0xe   : > { %v166_v0 = vld [vmem:[%s161_s17] sm:$0xff] }
   0xf   : > { %v170_v1 = vsel %vm169_vm0, %v166_v0, 0.0 }
  0x10   : > { %171 = vadd.xlane.f32.xlu0 %v170_v1 }
  0x12   : > { %v284_v3 = vpop.eup %283 }
  0x13   : > { %v174_v4 = vmul.f32 32.0, %v284_v3  ;;  %vm178_vm1 = vweird.f32 %v284_v3 }
  0x15   : > { %v175_v5 = vsub.f32 1.0, %v174_v4 }
  0x17   : > { %v176_v6 = vmul.f32 %v284_v3, %v175_v5 }
  0x19   : > { %v177_v7 = vadd.f32 %v284_v3, %v176_v6 }
  0x1b   : > { %v179_v8 = vsel %vm178_vm1, %v284_v3, %v177_v7 }
  0x83   : > { %v172_v9 = vpop.xlane.xlu0 %171 }
  0x84   : > { %v180_v10 = vmul.f32 %v179_v8, %v172_v9 }
  0x86   : > { %v181_v11 = vsub.f32 %v166_v0, %v180_v10 }
  0x88   : > { %v182_v12 = vmul.f32 %v181_v11, %v181_v11 }
  0x8a   : > { %v183_v13 = vsel %vm169_vm0, %v182_v12, 0.0 }
  0x8b   : > { %184 = vadd.xlane.f32.xlu0 %v183_v13 }
  0xfe   : > { %v185_v14 = vpop.xlane.xlu0 %184 }
  0xff   : > { %v186_v15 = vmul.f32 %v185_v14, %v179_v8 }
 0x101   : > { %v187_v16 = vadd.f32 1e-12, %v186_v15 }
 0x103   : > { %285 = vrsqrt.f32 %v187_v16  ;;  %vm194_vm3 = vweird.f32 %v187_v16 }
 0x109   : > { %v286_v17 = vpop.eup %285 }
 0x10a   : > { %v189_v18 = vmul.f32 %v286_v17, %v187_v16  ;;  %vm195_vm2 = vweird.f32 %v286_v17 }
 0x10b   : > { %vm196_vm4 = vmor %vm194_vm3, %vm195_vm2 }
 0x10c   : > { %v190_v19 = vmul.f32 %v286_v17, %v189_v18 }
 0x10e   : > { %v191_v20 = vmul.f32 0.5, %v190_v19 }
 0x110   : > { %v192_v21 = vsub.f32 1.5, %v191_v20 }
 0x112   : > { %v193_v22 = vmul.f32 %v286_v17, %v192_v21 }
 0x114   : > { %v197_v24 = vsel %vm196_vm4, %v286_v17, %v193_v22 }
 0x115   : > { %v198_v26 = vmul.f32 %v197_v24, %v181_v11 }
 0x117   : > { %v202_v27 = vmul.f32 %v281_v23, %v198_v26 }
 0x119   : > { %v206_v28 = vadd.f32 %v282_v25, %v202_v27 }
 0x11b   : > { %v207_v29 = vpack.c.bf16 %v206_v28, %v206_v28 }
 0x11d   : > { %209 = vst.msk [vmem:[%s165_s25] sm:$0xf] %vm208_vm5, %v207_v29 }
 0x11e PF: > { %s13_s12 = sadd.s32 1, %s293_s12  }
 0x11f   : > { %p10_p4 = scmp.ge.s32.totalorder %s13_s12, 4  }
 0x121   :  { %12 = sbr.rel (!%p10_p4) target bundleno = 1 (0x1), region = 62 }

// kernel: distilbert_class_forward.13
= control target key start
LH: loop header
LB: loop body
LE: loop exit
PB: predicated region body
PF: predicated region fallthrough
CT: control target
= control target key end

     0   :  { %s494_s21 = smov 0   ;;  %s537_s0 = inlined_call_operand.vmem [shape: bf16[16,32], index: 0, kind: input, shape index: {}]   ;;  %s538_s1 = inlined_call_operand.vmem [shape: bf16[16,32], index: 1, kind: input, shape index: {}]   ;;  %s539_s2 = inlined_call_operand.vmem [shape: bf16[32,32], index: 2, kind: input, shape index: {}]   ;;  %s540_s3 = inlined_call_operand.vmem [shape: f32[1,32], index: 3, kind: input, shape index: {}]   ;;  %s541_s4 = inlined_call_operand.vmem [shape: f32[1,32], index: 4, kind: input, shape index: {}]   ;;  %s542_s5 = inlined_call_operand.vmem [shape: f32[1,32], index: 5, kind: input, shape index: {}]   ;;  %s543_s6 = inlined_call_operand.vmem [shape: bf16[16,32], index: 6, kind: output, shape index: {}]  }
   0x1 LB: > { %s413_s22 = sadd.s32 4294967295, %s456_s21   ;;  %p417_p0 = scmp.ge.s32.totalorder %s456_s21, 1  ;;  %s456_s21 = sphi %s494_s21, %s16_s21  }
   0x2   : > { %p220_p1 = scmp.lt.s32.totalorder %s456_s21, 3 }
   0x4   : > { %p221_p2 = pnand %p417_p0, %p220_p1 }
   0x5   : > { %p252_p3 = scmp.lt.s32.totalorder (!%p221_p2), %s413_s22, 1 }
   0x6   : > { %224 = sbr.rel (%p221_p2) target bundleno = 420 (0x1a4), region = 44 }
   0xb   : > { %v433_v0 = vld [vmem:[%s539_s2 + $0x8] sm:$0xff]  ;;  %v432_v1 = vld [vmem:[%s539_s2] sm:$0xff]  ;;  %s545_s22 = smov (!%p252_p3, %s413_s22), 1  ;;  %vm286_vm0 = vcmask 261120   ;;  %v458_v11 = vmov 32.0   ;;  %vm346_vm5 = vcmask 257024  }
   0xc   : > { %296 = vmatpush.bf16.msra.mxu0 %v433_v0  ;;  %s508_s27 = sshll.u32 %s545_s22, 2  ;;  %v443_v4 = vld [vmem:[%s540_s3] ss:$0 sm:$0xff]  ;;  %446 = vrcp.f32 %v458_v11 }
   0xd   : > { %s255_s30 = scalar_lea.vmem %s537_s0, %s508_s27  ;;  %s259_s9 = scalar_lea.vmem %s538_s1, %s508_s27  ;;  %v444_v32 = vld [vmem:[%s541_s4] ss:$0 sm:$0xff] }
   0xe   : > { %v265_v2 = vld [vmem:[%s255_s30] sm:$0xf]  ;;  %s263_s18 = scalar_lea.vmem %s543_s6, %s508_s27 }
   0xf   : > { %v303_v3 = vld [vmem:[%s259_s9] sm:$0xf] }
  0x10   : > { %297 = vmatpush.bf16.msra.mxu0 %v432_v1  ;;  %v304_v5 = vunpack.c.l.bf16 %v303_v3  ;;  %v445_v34 = vld [vmem:[%s542_s5] ss:$0 sm:$0xff] }
  0x12   : > { %v447_v12 = vpop.eup %446 }
  0x13   : > { %429 = vmatmul.msk.bf16.vlgmr.msra.gmra.mxu0 %vm286_vm0, %v265_v2  ;;  %v312_v13 = vmul.f32 32.0, %v447_v12  ;;  %vm316_vm1 = vweird.f32 %v447_v12 }
  0x15   : > { %v313_v14 = vsub.f32 1.0, %v312_v13 }
  0x17   : > { %v314_v15 = vmul.f32 %v447_v12, %v313_v14 }
  0x19   : > { %v315_v16 = vadd.f32 %v447_v12, %v314_v15 }
  0x1b   : > { %v317_v17 = vsel %vm316_vm1, %v447_v12, %v315_v16 }
  0x90   : > { %v299_v6 = vpop.f32.mrf.mxu0 }
  0x91   : > { %v300_v7 = vadd.f32 %v443_v4, %v299_v6 }
  0x93   : > { %v305_v8 = vadd.f32 %v304_v5, %v300_v7 }
  0x95   : > { %v308_v9 = vsel %vm286_vm0, %v305_v8, 0.0 }
  0x96   : > { %309 = vadd.xlane.f32.xlu0 %v308_v9 }
  0x98   : > { %v301_v10 = vpop.f32.mrf.mxu0 }
 0x109   : > { %v310_v18 = vpop.xlane.xlu0 %309 }
 0x10a   : > { %v318_v19 = vmul.f32 %v317_v17, %v310_v18 }
 0x10c   : > { %v319_v20 = vsub.f32 %v305_v8, %v318_v19 }
 0x10e   : > { %v320_v21 = vmul.f32 %v319_v20, %v319_v20 }
 0x110   : > { %v321_v22 = vsel %vm286_vm0, %v320_v21, 0.0 }
 0x111   : > { %322 = vadd.xlane.f32.xlu0 %v321_v22 }
 0x184   : > { %v323_v23 = vpop.xlane.xlu0 %322 }
 0x185   : > { %v324_v24 = vmul.f32 %v323_v23, %v317_v17 }
 0x187   : > { %v325_v25 = vadd.f32 1e-12, %v324_v24 }
 0x189   : > { %448 = vrsqrt.f32 %v325_v25  ;;  %vm332_vm3 = vweird.f32 %v325_v25 }
 0x18f   : > { %v449_v26 = vpop.eup %448 }
 0x190   : > { %v327_v27 = vmul.f32 %v449_v26, %v325_v25  ;;  %vm333_vm2 = vweird.f32 %v449_v26 }
 0x191   : > { %vm334_vm4 = vmor %vm332_vm3, %vm333_vm2 }
 0x192   : > { %v328_v28 = vmul.f32 %v449_v26, %v327_v27 }
 0x194   : > { %v329_v29 = vmul.f32 0.5, %v328_v28 }
 0x196   : > { %v330_v30 = vsub.f32 1.5, %v329_v29 }
 0x198   : > { %v331_v31 = vmul.f32 %v449_v26, %v330_v30 }
 0x19a   : > { %v335_v33 = vsel %vm334_vm4, %v449_v26, %v331_v31 }
 0x19b   : > { %v336_v35 = vmul.f32 %v335_v33, %v319_v20 }
 0x19d   : > { %v340_v36 = vmul.f32 %v444_v32, %v336_v35 }
 0x19f   : > { %v344_v37 = vadd.f32 %v445_v34, %v340_v36 }
 0x1a1   : > { %v345_v38 = vpack.c.bf16 %v344_v37, %v344_v37 }
 0x1a3   : > { %347 = vst.msk [vmem:[%s263_s18] sm:$0xf] %vm346_vm5, %v345_v38 }
 0x1a4 PF: > { %s16_s21 = sadd.s32 1, %s456_s21  }
 0x1a5   : > { %p13_p4 = scmp.ge.s32.totalorder %s16_s21, 4  }
 0x1a7   :  { %15 = sbr.rel (!%p13_p4) target bundleno = 1 (0x1), region = 77 }

// kernel: distilbert_class_forward.19
= control target key start
LH: loop header
LB: loop body
LE: loop exit
PB: predicated region body
PF: predicated region fallthrough
CT: control target
= control target key end

     0   :  { %vm42_vm0 = vcmask 261120   ;;  %s180_s1 = inlined_call_operand.vmem [shape: bf16[32,32], index: 1, kind: input, shape index: {}]   ;;  %s181_s2 = inlined_call_operand.vmem [shape: f32[1,32], index: 2, kind: input, shape index: {}]   ;;  %s182_s0 = inlined_call_operand.vmem [shape: bf16[8,32], index: 0, kind: input, shape index: {}]   ;;  %s183_s4 = inlined_call_operand.vmem [shape: f32[1,128], index: 4, kind: input, shape index: {}]   ;;  %s184_s3 = inlined_call_operand.vmem [shape: bf16[32,128], index: 3, kind: input, shape index: {}]   ;;  %s185_s5 = inlined_call_operand.vmem [shape: f32[8,128], index: 5, kind: output, shape index: {}]  }
   0x1   :  { %v121_v0 = vld [vmem:[%s180_s1 + $0x8] sm:$0xff]  ;;  %v120_v1 = vld [vmem:[%s180_s1] sm:$0xff] }
   0x2   :  { %52 = vmatpush.bf16.msra.mxu0 %v121_v0  ;;  %v21_v2 = vld [vmem:[%s182_s0] sm:$0xf]  ;;  %v123_v3 = vld [vmem:[%s184_s3 + $0x8] sm:$0xff] }
   0x3   :  { %90 = vmatpush.bf16.msra.mxu1 %v123_v3  ;;  %v122_v4 = vld [vmem:[%s184_s3] sm:$0xff] }
   0x4   :  { %v124_v5 = vld [vmem:[%s181_s2] ss:$0 sm:$0xff] }
   0x5   :  { %v125_v11 = vld [vmem:[%s183_s4] ss:$0 sm:$0xff] }
   0x6   :  { %53 = vmatpush.bf16.msra.mxu0 %v120_v1 }
   0x7   :  { %91 = vmatpush.bf16.msra.mxu1 %v122_v4 }
   0x9   :  { %110 = vmatmul.msk.bf16.vlgmr.msra.gmra.mxu0 %vm42_vm0, %v21_v2 }
  0x86   :  { %v55_v6 = vpop.f32.mrf.mxu0 }
  0x87   :  { %v56_v7 = vadd.f32 %v124_v5, %v55_v6 }
  0x89   :  { %v59_v8 = vmax.f32 %v56_v7, 0.0 }
  0x8b   :  { %v60_v9 = vpack.c.bf16 %v59_v8, %v59_v8 }
  0x8d   :  { %119 = vmatmul.msk.bf16.vlgmr.msra.gmra.mxu1 %vm42_vm0, %v60_v9 }
  0x8e   :  { %v57_v10 = vpop.f32.mrf.mxu0 }
 0x10a   :  { %v93_v12 = vpop.f32.mrf.mxu1 }
 0x10b   :  { %v94_v13 = vadd.f32 %v125_v11, %v93_v12 }
 0x10d   :  { %97 = vst [vmem:[%s185_s5] sm:$0xff] %v94_v13 }
 0x112   :  { %v95_v14 = vpop.f32.mrf.mxu1 }

// kernel: distilbert_class_forward.14
= control target key start
LH: loop header
LB: loop body
LE: loop exit
PB: predicated region body
PF: predicated region fallthrough
CT: control target
= control target key end

     0   :  { %s833_s24 = smov 0   ;;  %s835_s25 = smov 0   ;;  %s924_s0 = inlined_call_operand.vmem [shape: bf16[16,32], index: 0, kind: input, shape index: {}]   ;;  %s925_s1 = inlined_call_operand.vmem [shape: bf16[32,128], index: 1, kind: input, shape index: {}]   ;;  %s926_s2 = inlined_call_operand.vmem [shape: f32[1,128], index: 2, kind: input, shape index: {}]   ;;  %s927_s3 = inlined_call_operand.vmem [shape: bf16[128,32], index: 3, kind: input, shape index: {}]   ;;  %s928_s4 = inlined_call_operand.vmem [shape: f32[1,32], index: 4, kind: input, shape index: {}]   ;;  %s929_s5 = inlined_call_operand.vmem [shape: f32[1,32], index: 5, kind: input, shape index: {}]   ;;  %s930_s6 = inlined_call_operand.vmem [shape: f32[1,32], index: 6, kind: input, shape index: {}]   ;;  %s931_s7 = inlined_call_operand.vmem [shape: bf16[16,32], index: 7, kind: output, shape index: {}]  }
   0x1   :  { %s837_s26 = smov 0  }
   0x2 LB: > { %s29_s27 = sadd.s32 1, %s785_s25  ;;  %p674_p0 = scmp.ge.s32.totalorder %s789_s26, 1  ;;  %s789_s26 = sphi %s837_s26, %s17_s26   ;;  %s785_s25 = sphi %s835_s25, %s933_s25   ;;  %s781_s24 = sphi %s833_s24, %s932_s24  }
   0x3   : > { %p31_p1 = scmp.ge.s32.totalorder %s29_s27, 2  ;;  %p276_p2 = scmp.lt.s32.totalorder %s789_s26, 3 }
   0x5   : > { %s935_s27 = smov (%p31_p1, %s29_s27), 0  ;;  %p277_p3 = pnand %p674_p0, %p276_p2 }
   0x6   : > { %p318_p4 = scmp.lt.s32.totalorder (!%p277_p3), %s781_s24, 1 }
   0x7   : > { %280 = sbr.rel (%p277_p3) target bundleno = 612 (0x264), region = 48 }
   0xc   : > { %v722_v0 = vld [vmem:[%s925_s1 + $0x8] sm:$0xff]  ;;  %v721_v1 = vld [vmem:[%s925_s1] sm:$0xff]  ;;  %s937_s24 = smov (!%p318_p4, %s781_s24), 1  ;;  %vm344_vm0 = vcmask 261120   ;;  %v730_v3 = vld [vmem:[%s927_s3 + $0x38] sm:$0xff]  ;;  %v791_v33 = vmov 0.0  }
   0xd   : > { %377 = vmatpush.bf16.msra.mxu0 %v722_v0  ;;  %s675_s9 = sshll.u32 %s937_s24, 2  ;;  %494 = vmatpush.bf16.msra.mxu1 %v730_v3  ;;  %v729_v4 = vld [vmem:[%s927_s3 + $0x30] sm:$0xff]  ;;  %v757_v5 = vld [vmem:[%s926_s2] ss:$0 sm:$0xff]  ;;  %v728_v6 = vld [vmem:[%s927_s3 + $0x28] sm:$0xff]  ;;  %345 = vst.msk [vmem:[#allocation2] sm:$0xff] %vm344_vm0, %v791_v33 }
   0xe   : > { %s865_s12 = scalar_lea.vmem %s924_s0, %s675_s9  ;;  %v727_v9 = vld [vmem:[%s927_s3 + $0x20] sm:$0xff]  ;;  %v726_v12 = vld [vmem:[%s927_s3 + $0x18] sm:$0xff]  ;;  %v725_v16 = vld [vmem:[%s927_s3 + $0x10] sm:$0xff]  ;;  %v792_v3 = vmov 32.0   ;;  %s338_s21 = scalar_lea.vmem %s931_s7, %s675_s9  ;;  %vm561_vm9 = vcmask 257024  }
   0xf   : > { %v346_v2 = vld [vmem:[%s865_s12] sm:$0xf]  ;;  %v724_v21 = vld [vmem:[%s927_s3 + $0x8] sm:$0xff] }
  0x10   : > { %v723_v25 = vld [vmem:[%s927_s3] sm:$0xff] }
  0x11   : > { %378 = vmatpush.bf16.msra.mxu0 %v721_v1  ;;  %495 = vmatpush.bf16.msra.mxu1 %v729_v4  ;;  %v518_v59 = vld [vmem:[%s865_s12] sm:$0xf] }
  0x12   : > { %v758_v60 = vld [vmem:[%s928_s4] ss:$0 sm:$0xff]  ;;  %v519_v62 = vunpack.c.l.bf16 %v518_v59 }
  0x14   : > { %685 = vmatmul.msk.bf16.vlgmr.msra.gmra.mxu0 %vm344_vm0, %v346_v2  ;;  %v428_v56 = vld [vmem:[#allocation2] sm:$0xff] }
  0x15   : > { %496 = vmatpush.bf16.msra.mxu1 %v728_v6 }
  0x19   : > { %497 = vmatpush.bf16.msra.mxu1 %v727_v9 }
  0x1d   : > { %498 = vmatpush.bf16.msra.mxu1 %v726_v12 }
  0x21   : > { %499 = vmatpush.bf16.msra.mxu1 %v725_v16 }
  0x25   : > { %500 = vmatpush.bf16.msra.mxu1 %v724_v21 }
  0x29   : > { %501 = vmatpush.bf16.msra.mxu1 %v723_v25 }
  0x91   : > { %v380_v7 = vpop.f32.mrf.mxu0 }
  0x92   : > { %v381_v8 = vadd.f32 %v757_v5, %v380_v7 }
  0x94   : > { %v385_v10 = vmul.f32 0.70710677, %v381_v8  ;;  %v384_v52 = vmul.f32 0.5, %v381_v8 }
  0x96   : > { %v386_v11 = vmul.f32 %v385_v10, %v385_v10 }
  0x98   : > { %v387_v13 = vmin.f32 %v386_v11, 16.0 }
  0x99   : > { %v382_v14 = vpop.f32.mrf.mxu0 }
  0x9a   : > { %v388_v15 = vmul.f32 2.1237322e-06, %v387_v13  ;;  %v399_v17 = vmul.f32 3.8918573e-05, %v387_v13 }
  0x9c   : > { %v389_v18 = vadd.f32 0.00028619796, %v388_v15  ;;  %v400_v19 = vadd.f32 0.001143296, %v399_v17 }
  0x9e   : > { %v390_v20 = vmul.f32 %v389_v18, %v387_v13  ;;  %v401_v22 = vmul.f32 %v400_v19, %v387_v13 }
  0xa0   : > { %v402_v23 = vadd.f32 0.014752088, %v401_v22  ;;  %v391_v24 = vadd.f32 0.0036580483, %v390_v20 }
  0xa2   : > { %v403_v26 = vmul.f32 %v402_v23, %v387_v13  ;;  %v392_v28 = vmul.f32 %v391_v24, %v387_v13  ;;  %v759_v24 = vld [vmem:[%s929_s5] ss:$0 sm:$0xff] }
  0xa4   : > { %v404_v27 = vadd.f32 0.112945676, %v403_v26  ;;  %v393_v31 = vadd.f32 0.05243302, %v392_v28  ;;  %v760_v26 = vld [vmem:[%s930_s6] ss:$0 sm:$0xff] }
  0xa6   : > { %v405_v29 = vmul.f32 %v404_v27, %v387_v13  ;;  %v394_v35 = vmul.f32 %v393_v31, %v387_v13 }
  0xa8   : > { %v406_v30 = vadd.f32 0.4994258, %v405_v29  ;;  %v395_v36 = vadd.f32 0.18741608, %v394_v35 }
  0xaa   : > { %v407_v32 = vmul.f32 %v406_v30, %v387_v13  ;;  %v396_v38 = vmul.f32 %v395_v36, %v387_v13 }
  0xac   : > { %v408_v34 = vadd.f32 1.0, %v407_v32  ;;  %v397_v42 = vadd.f32 1.1283791, %v396_v38 }
  0xae   : > { %761 = vrcp.f32 %v408_v34  ;;  %v420_v41 = vand.u32 2147483648, %v408_v34  ;;  %v418_v44 = vand.u32 2147483647, %v408_v34  ;;  %vm414_vm2 = vweird.f32 %v408_v34 }
  0xaf   : > { %v398_v47 = vmul.f32 %v397_v42, %v385_v10  ;;  %763 = vrcp.f32 %v792_v3 }
  0xb0   : > { %v421_v46 = vor.u32 1.1754944e-38, %v420_v41  ;;  %vm419_vm4 = vcmp.eq.f32.partialorder %v418_v44, 8.507059e+37 }
  0xb4   : > { %v762_v37 = vpop.eup %761 }
  0xb5   : > { %v410_v39 = vmul.f32 %v762_v37, %v408_v34  ;;  %vm415_vm1 = vweird.f32 %v762_v37  ;;  %v764_v4 = vpop.eup %763 }
  0xb6   : > { %vm416_vm3 = vmor %vm414_vm2, %vm415_vm1  ;;  %v527_v5 = vmul.f32 32.0, %v764_v4  ;;  %vm531_vm5 = vweird.f32 %v764_v4 }
  0xb7   : > { %v411_v40 = vsub.f32 1.0, %v410_v39 }
  0xb8   : > { %v528_v6 = vsub.f32 1.0, %v527_v5 }
  0xb9   : > { %v412_v43 = vmul.f32 %v762_v37, %v411_v40 }
  0xba   : > { %v529_v7 = vmul.f32 %v764_v4, %v528_v6 }
  0xbb   : > { %v413_v45 = vadd.f32 %v762_v37, %v412_v43 }
  0xbc   : > { %v530_v8 = vadd.f32 %v764_v4, %v529_v7 }
  0xbd   : > { %v417_v48 = vsel %vm416_vm3, %v762_v37, %v413_v45 }
  0xbe   : > { %v422_v49 = vsel %vm419_vm4, %v421_v46, %v417_v48  ;;  %v532_v9 = vsel %vm531_vm5, %v764_v4, %v530_v8 }
  0xbf   : > { %v423_v50 = vmul.f32 %v422_v49, %v398_v47 }
  0xc1   : > { %v686_v51 = vclamps-f32 %v423_v50, 1.0 }
  0xc3   : > { %v426_v53 = vadd.f32 1.0, %v686_v51 }
  0xc5   : > { %v427_v54 = vmul.f32 %v426_v53, %v384_v52 }
  0xc7   : > { %v429_v55 = vpack.c.bf16 %v427_v54, %v427_v54 }
  0xc9   : > { %502 = vmatmul.bf16.vlgmr.msra.gmra.mxu1 %v429_v55 }
 0x146   : > { %v503_v57 = vpop.f32.mrf.mxu1 }
 0x147   : > { %v507_v58 = vadd.f32 %v503_v57, %v428_v56 }
 0x149   : > { %508 = vst.msk [vmem:[#allocation2] sm:$0xff] %vm344_vm0, %v507_v58 }
 0x14e   : > { %v505_v61 = vpop.f32.mrf.mxu1 }
 0x150   : > { %v512_v63 = vld [vmem:[#allocation2] sm:$0xff] }
 0x151   : > { %v517_v0 = vadd.f32 %v758_v60, %v512_v63 }
 0x153   : > { %v520_v1 = vadd.f32 %v519_v62, %v517_v0 }
 0x155   : > { %v523_v2 = vsel %vm344_vm0, %v520_v1, 0.0 }
 0x156   : > { %524 = vadd.xlane.f32.xlu0 %v523_v2 }
 0x1c9   : > { %v525_v10 = vpop.xlane.xlu0 %524 }
 0x1ca   : > { %v533_v11 = vmul.f32 %v532_v9, %v525_v10 }
 0x1cc   : > { %v534_v12 = vsub.f32 %v520_v1, %v533_v11 }
 0x1ce   : > { %v535_v13 = vmul.f32 %v534_v12, %v534_v12 }
 0x1d0   : > { %v536_v14 = vsel %vm344_vm0, %v535_v13, 0.0 }
 0x1d1   : > { %537 = vadd.xlane.f32.xlu0 %v536_v14 }
 0x244   : > { %v538_v15 = vpop.xlane.xlu0 %537 }
 0x245   : > { %v539_v16 = vmul.f32 %v538_v15, %v532_v9 }
 0x247   : > { %v540_v17 = vadd.f32 1e-12, %v539_v16 }
 0x249   : > { %765 = vrsqrt.f32 %v540_v17  ;;  %vm547_vm7 = vweird.f32 %v540_v17 }
 0x24f   : > { %v766_v18 = vpop.eup %765 }
 0x250   : > { %v542_v19 = vmul.f32 %v766_v18, %v540_v17  ;;  %vm548_vm6 = vweird.f32 %v766_v18 }
 0x251   : > { %vm549_vm8 = vmor %vm547_vm7, %vm548_vm6 }
 0x252   : > { %v543_v20 = vmul.f32 %v766_v18, %v542_v19 }
 0x254   : > { %v544_v21 = vmul.f32 0.5, %v543_v20 }
 0x256   : > { %v545_v22 = vsub.f32 1.5, %v544_v21 }
 0x258   : > { %v546_v23 = vmul.f32 %v766_v18, %v545_v22 }
 0x25a   : > { %v550_v25 = vsel %vm549_vm8, %v766_v18, %v546_v23 }
 0x25b   : > { %v551_v27 = vmul.f32 %v550_v25, %v534_v12 }
 0x25d   : > { %v555_v28 = vmul.f32 %v759_v24, %v551_v27 }
 0x25f   : > { %v559_v29 = vadd.f32 %v760_v26, %v555_v28 }
 0x261   : > { %v560_v30 = vpack.c.bf16 %v559_v29, %v559_v29 }
 0x263   : > { %562 = vst.msk [vmem:[%s338_s21] sm:$0xf] %vm561_vm9, %v560_v30 }
 0x264 PF: > { %s17_s26 = sadd.s32 1, %s789_s26   ;;  %s932_s24 = smov %s785_s25 }
 0x265   : > { %p14_p5 = scmp.ge.s32.totalorder %s17_s26, 4   ;;  %s933_s25 = smov %s935_s27 }
 0x267   :  { %16 = sbr.rel (!%p14_p5) target bundleno = 2 (0x2), region = 95 }

</bundles_post_ra>
